<compile_context>
chip_gen: v5e
topology: v5e:2x2
jax: 0.10.0
libtpu: 0.0.40
codegen_flags: <defaults>
</compile_context>

<pallas_src>
import functools
import math

import jax
import jax.numpy as jnp
from jax import lax
from jax.experimental import pallas as pl
from jax.experimental.pallas import tpu as pltpu

HIDDEN = 32          # hidden_channels
NUM_LAYERS = 2
IN_DIM = 32          # lazy Linear(-1, hidden) resolved to the 32-dim embeddings
NODE_TYPES = ("author", "topic")
EDGE_TYPES = (("author", "writes", "topic"), ("topic", "rev_writes", "author"))
NEG_INF = -1e30

VMEM = pl.BlockSpec(memory_space=pltpu.MemorySpace.VMEM)
SMEM = pl.BlockSpec(memory_space=pltpu.MemorySpace.SMEM)


# --------------------------- fused forward kernel ----------------------------

def _fused_model_kernel(x_a_ref, x_t_ref,
                        w32_ref,        # (9,32,32): enc_a, enc_t, a_lin[l0_a,l0_t,l1_a,l1_t], W1_top, W1_bot, W2(pad)
                        b32_ref,        # (7,32):    enc_b_a, enc_b_t, a_lin_b x4, dec_b1
                        kqv_w_ref,      # (4,32,96): [layer*2 + type], K/V pre-folded with a_rel/m_rel
                        kqv_b_ref,      # (4,96)
                        idx_ref,        # (2L + 2E, 2) int32: [label row ids; label col ids; ei_writes; ei_rev]
                        scal_ref,       # (9,) f32 SMEM: [beta_a, beta_t, pscale_w, pscale_r] x2 layers, dec_b2
                        o_ref,          # (1, L) f32 (lane-dense)
                        *, n_labels, n_edges):
    f32 = jnp.float32
    d = HIDDEN
    na = x_a_ref.shape[0]
    nt = x_t_ref.shape[0]
    two_l = 2 * n_labels

    # ---- dense additive attention bias + row gate via one-hot matmul (built once, reused
    #      by both HGTConv layers; padded edges use -1 sentinels -> all-zero one-hots)
    def build_bias(row_off, n_src, n_dst):
        src = idx_ref[row_off:row_off + n_edges, 0:1]                     # (E, 1) int32
        dst = idx_ref[row_off:row_off + n_edges, 1:2]                     # (E, 1) int32
        src_oh = (lax.broadcasted_iota(jnp.int32, (n_edges, n_src), 1) == src).astype(f32)
        dst_oh = (lax.broadcasted_iota(jnp.int32, (n_edges, n_dst), 1) == dst).astype(f32)
        cnt = lax.dot_general(dst_oh, src_oh, (((0,), (0,)), ((), ())),
                              preferred_element_type=f32)                 # (n_dst, n_src)
        bias = jnp.where(cnt > 0.5, 0.0, NEG_INF)
        gate = (jnp.max(cnt, axis=-1, keepdims=True) > 0.5).astype(f32)   # dst rows with >=1 edge
        return bias, gate

    bias_t, gate_t = build_bias(two_l, na, nt)                 # author -writes->     topic
    bias_a, gate_a = build_bias(two_l + n_edges, nt, na)       # topic  -rev_writes-> author

    # ---- GNNEncoder: per-type Linear(-1, hidden) + ReLU
    h_a = jnp.maximum(
        jnp.dot(x_a_ref[...], w32_ref[0], preferred_element_type=f32) + b32_ref[0], 0.0)
    h_t = jnp.maximum(
        jnp.dot(x_t_ref[...], w32_ref[1], preferred_element_type=f32) + b32_ref[1], 0.0)

    # ---- masked per-relation attention (k/v already relation-transformed; bias/gate hoisted)
    def attention(q_dst, k_rel, v_rel, bias, gate, pscale):
        s = lax.dot_general(q_dst, k_rel, (((1,), (1,)), ((), ())),
                            preferred_element_type=f32) * pscale + bias
        m = jnp.max(s, axis=-1, keepdims=True)
        p = jnp.exp(s - m)                                     # masked entries underflow to 0
        alpha = p * (gate / jnp.sum(p, axis=-1, keepdims=True))
        return jnp.dot(alpha, v_rel, preferred_element_type=f32)

    # ---- 2 x HGTConv (num_heads=1)
    for l in range(NUM_LAYERS):
        kqv_a = jnp.dot(h_a, kqv_w_ref[2 * l + 0], preferred_element_type=f32) + kqv_b_ref[2 * l + 0]
        kqv_t = jnp.dot(h_t, kqv_w_ref[2 * l + 1], preferred_element_type=f32) + kqv_b_ref[2 * l + 1]
        k_a, q_a, v_a = kqv_a[:, 0:d], kqv_a[:, d:2 * d], kqv_a[:, 2 * d:3 * d]
        k_t, q_t, v_t = kqv_t[:, 0:d], kqv_t[:, d:2 * d], kqv_t[:, 2 * d:3 * d]

        # relation 0: author -writes-> topic (dst = topic); relation 1: reverse (dst = author)
        agg_t = attention(q_t, k_a, v_a, bias_t, gate_t, scal_ref[4 * l + 2])
        agg_a = attention(q_a, k_t, v_t, bias_a, gate_a, scal_ref[4 * l + 3])

        # per-type output: gelu -> a_lin -> sigmoid-skip gate (sigmoid folded at pack time)
        def out_update(agg, h_prev, idx, beta):
            a = jax.nn.gelu(agg)
            a = jnp.dot(a, w32_ref[idx], preferred_element_type=f32) + b32_ref[idx]
            return beta * a + (1.0 - beta) * h_prev

        h_a = out_update(agg_a, h_a, 2 + 2 * l + 0, scal_ref[4 * l + 0])
        h_t = out_update(agg_t, h_t, 2 + 2 * l + 1, scal_ref[4 * l + 1])

    # ---- EdgeDecoder: one fused one-hot gather of both author rows, split-W1 (no concat)
    sel = (lax.broadcasted_iota(jnp.int32, (two_l, na), 1)
           == idx_ref[0:two_l, 0:1]).astype(f32)                          # (2L, Na)
    z = jnp.dot(sel, h_a, preferred_element_type=f32)                     # rows 0..L-1: z[row], L..2L-1: z[col]
    hid = jnp.maximum(
        jnp.dot(z[0:n_labels], w32_ref[6], preferred_element_type=f32)
        + jnp.dot(z[n_labels:two_l], w32_ref[7], preferred_element_type=f32)
        + b32_ref[6], 0.0)                                                # lin1(...).relu()
    w2 = w32_ref[8][:, 0:1]                                               # (d, 1)
    o_ref[...] = lax.dot_general(w2, hid, (((0,), (1,)), ((), ())),
                                 preferred_element_type=f32) + scal_ref[8]


# --------------------------- parameters --------------------------------------

def init_params(key):
    keys = iter(jax.random.split(key, 96))

    def dense(shape):
        fan_in = shape[0]
        bound = 1.0 / math.sqrt(fan_in)
        return jax.random.uniform(next(keys), shape, jnp.float32, -bound, bound)

    params = {
        "lin_dict": {nt: {"w": dense((IN_DIM, HIDDEN)), "b": dense((HIDDEN,))}
                     for nt in NODE_TYPES},
        "convs": [],
        "decoder": {"w1": dense((2 * HIDDEN, HIDDEN)), "b1": dense((HIDDEN,)),
                    "w2": dense((HIDDEN, 1)), "b2": dense((1,))},
    }
    for _ in range(NUM_LAYERS):
        layer = {"k": {}, "q": {}, "v": {}, "a_lin": {}, "skip": {},
                 "a_rel": {}, "m_rel": {}, "p_rel": {}}
        for nt in NODE_TYPES:
            for name in ("k", "q", "v", "a_lin"):
                layer[name][nt] = {"w": dense((HIDDEN, HIDDEN)), "b": dense((HIDDEN,))}
            layer["skip"][nt] = jnp.ones((), jnp.float32)
        for et in EDGE_TYPES:
            layer["a_rel"][et] = dense((HIDDEN, HIDDEN))
            layer["m_rel"][et] = dense((HIDDEN, HIDDEN))
            layer["p_rel"][et] = jnp.ones((), jnp.float32)
        params["convs"].append(layer)
    # embedding tables declared in Model.__init__ (used here as node features)
    params["emb_author"] = jax.random.normal(next(keys), (16, IN_DIM), jnp.float32)
    params["emb_topic"] = jax.random.normal(next(keys), (16, IN_DIM), jnp.float32)
    return params


def pack_params(params):
    """One-time weight packing (call OUTSIDE the jitted forward and reuse the result).

    Folds a_rel/m_rel into the K/V weights, sigmoid(skip) and p_rel/sqrt(d) into scalars,
    and stacks everything into a handful of lane-dense slabs.
    """
    d = HIDDEN
    w32 = [params["lin_dict"]["author"]["w"], params["lin_dict"]["topic"]["w"]]
    b32 = [params["lin_dict"]["author"]["b"], params["lin_dict"]["topic"]["b"]]
    kqv_w, kqv_b, scal = [], [], []
    for layer in params["convs"]:
        for nt, et in zip(NODE_TYPES, EDGE_TYPES):      # each node type is src of exactly one relation
            a_rel, m_rel = layer["a_rel"][et], layer["m_rel"][et]
            kw = layer["k"][nt]["w"] @ a_rel
            kb = layer["k"][nt]["b"] @ a_rel
            vw = layer["v"][nt]["w"] @ m_rel
            vb = layer["v"][nt]["b"] @ m_rel
            kqv_w.append(jnp.concatenate([kw, layer["q"][nt]["w"], vw], axis=1))      # (32, 96)
            kqv_b.append(jnp.concatenate([kb, layer["q"][nt]["b"], vb]))              # (96,)
            w32.append(layer["a_lin"][nt]["w"])
            b32.append(layer["a_lin"][nt]["b"])
        scal.extend([
            jax.nn.sigmoid(layer["skip"]["author"]),
            jax.nn.sigmoid(layer["skip"]["topic"]),
            layer["p_rel"][EDGE_TYPES[0]] / math.sqrt(d),
            layer["p_rel"][EDGE_TYPES[1]] / math.sqrt(d),
        ])
    dec = params["decoder"]
    w32.append(dec["w1"][0:d, :])
    w32.append(dec["w1"][d:2 * d, :])
    w32.append(jnp.pad(dec["w2"], ((0, 0), (0, d - 1))))       # (32, 32), column 0 = w2
    b32.append(dec["b1"])
    scal.append(dec["b2"][0])
    return dict(
        w32=jnp.stack(w32).astype(jnp.float32),                # (9, 32, 32)
        b32=jnp.stack(b32).astype(jnp.float32),                # (7, 32)
        kqv_w=jnp.stack(kqv_w).astype(jnp.float32),            # (4, 32, 96)
        kqv_b=jnp.stack(kqv_b).astype(jnp.float32),            # (4, 96)
        scal=jnp.stack(scal).astype(jnp.float32),              # (9,)
    )


# --------------------------- model forward ------------------------------------

def _round_up(n, m):
    return -(-n // m) * m


def _pad_rows(x, rows, fill):
    pad = rows - x.shape[0]
    if pad:
        x = jnp.concatenate([x, jnp.full((pad,) + x.shape[1:], fill, x.dtype)], axis=0)
    return x


@jax.jit
def model_forward(packed, x_dict, edge_index_dict, edge_label_index):
    x_a = x_dict["author"].astype(jnp.float32)
    x_t = x_dict["topic"].astype(jnp.float32)
    n_labels = edge_label_index.shape[1]

    # label section: [row ids; col ids], each padded to a multiple of 8 (pad rows gather
    # author 0 and are sliced off the output below)
    n_lab_pad = _round_up(n_labels, 8)
    row = _pad_rows(edge_label_index[0].astype(jnp.int32).reshape(-1, 1), n_lab_pad, 0)
    col = _pad_rows(edge_label_index[1].astype(jnp.int32).reshape(-1, 1), n_lab_pad, 0)
    lab = jnp.concatenate([row, col], axis=0)                              # (2*L_pad, 1)
    lab_rows = jnp.concatenate([lab, jnp.zeros_like(lab)], axis=1)         # (2*L_pad, 2)

    # edge sections as (E_pad, 2) [src, dst]; -1 sentinel padding never matches any node id
    ei_w = edge_index_dict[EDGE_TYPES[0]].T.astype(jnp.int32)
    ei_r = edge_index_dict[EDGE_TYPES[1]].T.astype(jnp.int32)
    e_pad = _round_up(max(ei_w.shape[0], ei_r.shape[0]), 8)
    ei_w = _pad_rows(ei_w, e_pad, -1)
    ei_r = _pad_rows(ei_r, e_pad, -1)

    idx = jnp.concatenate([lab_rows, ei_w, ei_r], axis=0)                  # (2L_pad + 2E_pad, 2)

    out = pl.pallas_call(
        functools.partial(_fused_model_kernel, n_labels=n_lab_pad, n_edges=e_pad),
        out_shape=jax.ShapeDtypeStruct((1, n_lab_pad), jnp.float32),       # lane-dense output
        in_specs=[VMEM] * 7 + [SMEM],
        out_specs=VMEM,
    )(x_a, x_t, packed["w32"], packed["b32"], packed["kqv_w"], packed["kqv_b"],
      idx, packed["scal"])
    return out[0, :n_labels]                                               # .view(-1)


# --------------------------- driver --------------------------------------------

if __name__ == "__main__":
    key = jax.random.PRNGKey(0)
    p_key, k1, k2, k3 = jax.random.split(key, 4)
    params = init_params(p_key)
    packed = pack_params(params)          # packed once, reused across calls

    n_author, n_topic, n_edges, n_labels = 16, 16, 24, 8

    # node features (32-dim, mirroring the 32-dim embedding tables)
    x_dict = {"author": params["emb_author"], "topic": params["emb_topic"]}

    # hetero edge indices
    src_a = jax.random.randint(k1, (n_edges,), 0, n_author, dtype=jnp.int32)
    dst_t = jax.random.randint(k2, (n_edges,), 0, n_topic, dtype=jnp.int32)
    edge_index_dict = {
        ("author", "writes", "topic"): jnp.stack([src_a, dst_t]),
        ("topic", "rev_writes", "author"): jnp.stack([dst_t, src_a]),
    }
    edge_label_index = jax.random.randint(k3, (2, n_labels), 0, n_author, dtype=jnp.int32)

    out = model_forward(packed, x_dict, edge_index_dict, edge_label_index)
    out = jax.block_until_ready(out)
    assert out.shape == (n_labels,) and out.dtype == jnp.float32
    assert bool(jnp.all(jnp.isfinite(out)))
    print("KERNEL_OK")
</pallas_src>

<mosaic_0001>
module attributes {stable_mosaic.version = 11 : i64} {
  func.func @_fused_model_kernel(%arg0: memref<16x32xf32, #tpu.memory_space<vmem>>, %arg1: memref<16x32xf32, #tpu.memory_space<vmem>>, %arg2: memref<9x32x32xf32, #tpu.memory_space<vmem>>, %arg3: memref<7x32xf32, #tpu.memory_space<vmem>>, %arg4: memref<4x32x96xf32, #tpu.memory_space<vmem>>, %arg5: memref<4x96xf32, #tpu.memory_space<vmem>>, %arg6: memref<64x2xi32, #tpu.memory_space<vmem>>, %arg7: memref<9xf32, #tpu.memory_space<smem>>, %arg8: memref<1x8xf32, #tpu.memory_space<vmem>>) attributes {dimension_semantics = [], scalar_prefetch = 0 : i64, scratch_operands = 0 : i64, tpu.core_type = #tpu.core_type<tc>} {
    %c16 = arith.constant 16 : index
    %c0 = arith.constant 0 : index
    %0 = vector.load %arg6[%c16, %c0] : memref<64x2xi32, #tpu.memory_space<vmem>>, vector<24x1xi32>
    %c16_0 = arith.constant 16 : index
    %c1 = arith.constant 1 : index
    %1 = vector.load %arg6[%c16_0, %c1] : memref<64x2xi32, #tpu.memory_space<vmem>>, vector<24x1xi32>
    %2 = tpu.iota {dimensions = array<i32: 1>} : vector<24x16xi32>
    %3 = vector.broadcast %0 : vector<24x1xi32> to vector<24x16xi32>
    %4 = arith.cmpi eq, %2, %3 : vector<24x16xi32>
    %5 = arith.extui %4 : vector<24x16xi1> to vector<24x16xi32>
    %6 = arith.sitofp %5 : vector<24x16xi32> to vector<24x16xf32>
    %7 = tpu.iota {dimensions = array<i32: 1>} : vector<24x16xi32>
    %8 = vector.broadcast %1 : vector<24x1xi32> to vector<24x16xi32>
    %9 = arith.cmpi eq, %7, %8 : vector<24x16xi32>
    %10 = arith.extui %9 : vector<24x16xi1> to vector<24x16xi32>
    %11 = arith.sitofp %10 : vector<24x16xi32> to vector<24x16xf32>
    %cst = arith.constant dense<0.000000e+00> : vector<16x16xf32>
    %12 = tpu.matmul %11, %6, %cst {dimension_numbers = #tpu.dot_dimension_numbers<[0], [0], [1], [1], [0, 1, 1, 1], [], []>} : vector<24x16xf32>, vector<24x16xf32>, vector<16x16xf32> -> vector<16x16xf32>
    %cst_1 = arith.constant 5.000000e-01 : f32
    %13 = vector.broadcast %cst_1 : f32 to vector<16x16xf32>
    %14 = arith.cmpf ogt, %12, %13 : vector<16x16xf32>
    %cst_2 = arith.constant 0.000000e+00 : f32
    %cst_3 = arith.constant -1.000000e+30 : f32
    %15 = vector.broadcast %cst_2 : f32 to vector<16x16xf32>
    %16 = vector.broadcast %cst_3 : f32 to vector<16x16xf32>
    %17 = arith.select %14, %15, %16 : vector<16x16xi1>, vector<16x16xf32>
    %cst_4 = arith.constant dense<0xFF800000> : vector<16xf32>
    %18 = vector.multi_reduction <maximumf>, %12, %cst_4 [1] : vector<16x16xf32> to vector<16xf32>
    %19 = vector.shape_cast %18 : vector<16xf32> to vector<16x1xf32>
    %cst_5 = arith.constant 5.000000e-01 : f32
    %20 = vector.broadcast %cst_5 : f32 to vector<16x1xf32>
    %21 = arith.cmpf ogt, %19, %20 : vector<16x1xf32>
    %22 = arith.extui %21 : vector<16x1xi1> to vector<16x1xi32>
    %23 = arith.sitofp %22 : vector<16x1xi32> to vector<16x1xf32>
    %c40 = arith.constant 40 : index
    %c0_6 = arith.constant 0 : index
    %24 = vector.load %arg6[%c40, %c0_6] : memref<64x2xi32, #tpu.memory_space<vmem>>, vector<24x1xi32>
    %c40_7 = arith.constant 40 : index
    %c1_8 = arith.constant 1 : index
    %25 = vector.load %arg6[%c40_7, %c1_8] : memref<64x2xi32, #tpu.memory_space<vmem>>, vector<24x1xi32>
    %26 = tpu.iota {dimensions = array<i32: 1>} : vector<24x16xi32>
    %27 = vector.broadcast %24 : vector<24x1xi32> to vector<24x16xi32>
    %28 = arith.cmpi eq, %26, %27 : vector<24x16xi32>
    %29 = arith.extui %28 : vector<24x16xi1> to vector<24x16xi32>
    %30 = arith.sitofp %29 : vector<24x16xi32> to vector<24x16xf32>
    %31 = tpu.iota {dimensions = array<i32: 1>} : vector<24x16xi32>
    %32 = vector.broadcast %25 : vector<24x1xi32> to vector<24x16xi32>
    %33 = arith.cmpi eq, %31, %32 : vector<24x16xi32>
    %34 = arith.extui %33 : vector<24x16xi1> to vector<24x16xi32>
    %35 = arith.sitofp %34 : vector<24x16xi32> to vector<24x16xf32>
    %cst_9 = arith.constant dense<0.000000e+00> : vector<16x16xf32>
    %36 = tpu.matmul %35, %30, %cst_9 {dimension_numbers = #tpu.dot_dimension_numbers<[0], [0], [1], [1], [0, 1, 1, 1], [], []>} : vector<24x16xf32>, vector<24x16xf32>, vector<16x16xf32> -> vector<16x16xf32>
    %cst_10 = arith.constant 5.000000e-01 : f32
    %37 = vector.broadcast %cst_10 : f32 to vector<16x16xf32>
    %38 = arith.cmpf ogt, %36, %37 : vector<16x16xf32>
    %cst_11 = arith.constant 0.000000e+00 : f32
    %cst_12 = arith.constant -1.000000e+30 : f32
    %39 = vector.broadcast %cst_11 : f32 to vector<16x16xf32>
    %40 = vector.broadcast %cst_12 : f32 to vector<16x16xf32>
    %41 = arith.select %38, %39, %40 : vector<16x16xi1>, vector<16x16xf32>
    %cst_13 = arith.constant dense<0xFF800000> : vector<16xf32>
    %42 = vector.multi_reduction <maximumf>, %36, %cst_13 [1] : vector<16x16xf32> to vector<16xf32>
    %43 = vector.shape_cast %42 : vector<16xf32> to vector<16x1xf32>
    %cst_14 = arith.constant 5.000000e-01 : f32
    %44 = vector.broadcast %cst_14 : f32 to vector<16x1xf32>
    %45 = arith.cmpf ogt, %43, %44 : vector<16x1xf32>
    %46 = arith.extui %45 : vector<16x1xi1> to vector<16x1xi32>
    %47 = arith.sitofp %46 : vector<16x1xi32> to vector<16x1xf32>
    %c0_15 = arith.constant 0 : index
    %c0_16 = arith.constant 0 : index
    %48 = vector.load %arg0[%c0_15, %c0_16] : memref<16x32xf32, #tpu.memory_space<vmem>>, vector<16x32xf32>
    %c0_17 = arith.constant 0 : index
    %c0_18 = arith.constant 0 : index
    %c0_19 = arith.constant 0 : index
    %49 = vector.load %arg2[%c0_17, %c0_18, %c0_19] : memref<9x32x32xf32, #tpu.memory_space<vmem>>, vector<1x32x32xf32>
    %50 = vector.shape_cast %49 : vector<1x32x32xf32> to vector<32x32xf32>
    %cst_20 = arith.constant dense<0.000000e+00> : vector<16x32xf32>
    %51 = tpu.matmul %48, %50, %cst_20 {dimension_numbers = #tpu.dot_dimension_numbers<[1], [0], [0], [1], [0, 0, 1, 1], [], []>} : vector<16x32xf32>, vector<32x32xf32>, vector<16x32xf32> -> vector<16x32xf32>
    %c0_21 = arith.constant 0 : index
    %c0_22 = arith.constant 0 : index
    %52 = vector.load %arg3[%c0_21, %c0_22] : memref<7x32xf32, #tpu.memory_space<vmem>>, vector<1x32xf32>
    %53 = vector.shape_cast %52 : vector<1x32xf32> to vector<32xf32>
    %54 = vector.shape_cast %53 : vector<32xf32> to vector<1x32xf32>
    %55 = vector.broadcast %54 : vector<1x32xf32> to vector<16x32xf32>
    %56 = arith.addf %51, %55 : vector<16x32xf32>
    %cst_23 = arith.constant 0.000000e+00 : f32
    %57 = vector.broadcast %cst_23 : f32 to vector<16x32xf32>
    %58 = arith.maximumf %56, %57 : vector<16x32xf32>
    %c0_24 = arith.constant 0 : index
    %c0_25 = arith.constant 0 : index
    %59 = vector.load %arg1[%c0_24, %c0_25] : memref<16x32xf32, #tpu.memory_space<vmem>>, vector<16x32xf32>
    %c1_26 = arith.constant 1 : index
    %c0_27 = arith.constant 0 : index
    %c0_28 = arith.constant 0 : index
    %60 = vector.load %arg2[%c1_26, %c0_27, %c0_28] : memref<9x32x32xf32, #tpu.memory_space<vmem>>, vector<1x32x32xf32>
    %61 = vector.shape_cast %60 : vector<1x32x32xf32> to vector<32x32xf32>
    %cst_29 = arith.constant dense<0.000000e+00> : vector<16x32xf32>
    %62 = tpu.matmul %59, %61, %cst_29 {dimension_numbers = #tpu.dot_dimension_numbers<[1], [0], [0], [1], [0, 0, 1, 1], [], []>} : vector<16x32xf32>, vector<32x32xf32>, vector<16x32xf32> -> vector<16x32xf32>
    %c1_30 = arith.constant 1 : index
    %c0_31 = arith.constant 0 : index
    %63 = vector.load %arg3[%c1_30, %c0_31] : memref<7x32xf32, #tpu.memory_space<vmem>>, vector<1x32xf32>
    %64 = vector.shape_cast %63 : vector<1x32xf32> to vector<32xf32>
    %65 = vector.shape_cast %64 : vector<32xf32> to vector<1x32xf32>
    %66 = vector.broadcast %65 : vector<1x32xf32> to vector<16x32xf32>
    %67 = arith.addf %62, %66 : vector<16x32xf32>
    %cst_32 = arith.constant 0.000000e+00 : f32
    %68 = vector.broadcast %cst_32 : f32 to vector<16x32xf32>
    %69 = arith.maximumf %67, %68 : vector<16x32xf32>
    %c0_33 = arith.constant 0 : index
    %c0_34 = arith.constant 0 : index
    %c0_35 = arith.constant 0 : index
    %70 = vector.load %arg4[%c0_33, %c0_34, %c0_35] : memref<4x32x96xf32, #tpu.memory_space<vmem>>, vector<1x32x96xf32>
    %71 = vector.shape_cast %70 : vector<1x32x96xf32> to vector<32x96xf32>
    %cst_36 = arith.constant dense<0.000000e+00> : vector<16x96xf32>
    %72 = tpu.matmul %58, %71, %cst_36 {dimension_numbers = #tpu.dot_dimension_numbers<[1], [0], [0], [1], [0, 0, 1, 1], [], []>} : vector<16x32xf32>, vector<32x96xf32>, vector<16x96xf32> -> vector<16x96xf32>
    %c0_37 = arith.constant 0 : index
    %c0_38 = arith.constant 0 : index
    %73 = vector.load %arg5[%c0_37, %c0_38] : memref<4x96xf32, #tpu.memory_space<vmem>>, vector<1x96xf32>
    %74 = vector.shape_cast %73 : vector<1x96xf32> to vector<96xf32>
    %75 = vector.shape_cast %74 : vector<96xf32> to vector<1x96xf32>
    %76 = vector.broadcast %75 : vector<1x96xf32> to vector<16x96xf32>
    %77 = arith.addf %72, %76 : vector<16x96xf32>
    %c1_39 = arith.constant 1 : index
    %c0_40 = arith.constant 0 : index
    %c0_41 = arith.constant 0 : index
    %78 = vector.load %arg4[%c1_39, %c0_40, %c0_41] : memref<4x32x96xf32, #tpu.memory_space<vmem>>, vector<1x32x96xf32>
    %79 = vector.shape_cast %78 : vector<1x32x96xf32> to vector<32x96xf32>
    %cst_42 = arith.constant dense<0.000000e+00> : vector<16x96xf32>
    %80 = tpu.matmul %69, %79, %cst_42 {dimension_numbers = #tpu.dot_dimension_numbers<[1], [0], [0], [1], [0, 0, 1, 1], [], []>} : vector<16x32xf32>, vector<32x96xf32>, vector<16x96xf32> -> vector<16x96xf32>
    %c1_43 = arith.constant 1 : index
    %c0_44 = arith.constant 0 : index
    %81 = vector.load %arg5[%c1_43, %c0_44] : memref<4x96xf32, #tpu.memory_space<vmem>>, vector<1x96xf32>
    %82 = vector.shape_cast %81 : vector<1x96xf32> to vector<96xf32>
    %83 = vector.shape_cast %82 : vector<96xf32> to vector<1x96xf32>
    %84 = vector.broadcast %83 : vector<1x96xf32> to vector<16x96xf32>
    %85 = arith.addf %80, %84 : vector<16x96xf32>
    %86 = vector.extract_strided_slice %77 {offsets = [0, 0], sizes = [16, 32], strides = [1, 1]} : vector<16x96xf32> to vector<16x32xf32>
    %87 = vector.extract_strided_slice %77 {offsets = [0, 32], sizes = [16, 32], strides = [1, 1]} : vector<16x96xf32> to vector<16x32xf32>
    %88 = vector.extract_strided_slice %77 {offsets = [0, 64], sizes = [16, 32], strides = [1, 1]} : vector<16x96xf32> to vector<16x32xf32>
    %89 = vector.extract_strided_slice %85 {offsets = [0, 0], sizes = [16, 32], strides = [1, 1]} : vector<16x96xf32> to vector<16x32xf32>
    %90 = vector.extract_strided_slice %85 {offsets = [0, 32], sizes = [16, 32], strides = [1, 1]} : vector<16x96xf32> to vector<16x32xf32>
    %91 = vector.extract_strided_slice %85 {offsets = [0, 64], sizes = [16, 32], strides = [1, 1]} : vector<16x96xf32> to vector<16x32xf32>
    %c2 = arith.constant 2 : index
    %92 = memref.load %arg7[%c2] : memref<9xf32, #tpu.memory_space<smem>>
    %cst_45 = arith.constant dense<0.000000e+00> : vector<16x16xf32>
    %93 = tpu.matmul %90, %86, %cst_45 {dimension_numbers = #tpu.dot_dimension_numbers<[1], [1], [0], [0], [0, 0, 1, 0], [], []>} : vector<16x32xf32>, vector<16x32xf32>, vector<16x16xf32> -> vector<16x16xf32>
    %94 = vector.broadcast %92 : f32 to vector<16x16xf32>
    %95 = arith.mulf %93, %94 : vector<16x16xf32>
    %96 = arith.addf %95, %17 : vector<16x16xf32>
    %cst_46 = arith.constant dense<0xFF800000> : vector<16xf32>
    %97 = vector.multi_reduction <maximumf>, %96, %cst_46 [1] : vector<16x16xf32> to vector<16xf32>
    %98 = vector.shape_cast %97 : vector<16xf32> to vector<16x1xf32>
    %99 = vector.broadcast %98 : vector<16x1xf32> to vector<16x16xf32>
    %100 = arith.subf %96, %99 : vector<16x16xf32>
    %101 = math.exp %100 : vector<16x16xf32>
    %cst_47 = arith.constant dense<0.000000e+00> : vector<16xf32>
    %102 = vector.multi_reduction <add>, %101, %cst_47 [1] : vector<16x16xf32> to vector<16xf32>
    %103 = vector.shape_cast %102 : vector<16xf32> to vector<16x1xf32>
    %104 = arith.divf %23, %103 : vector<16x1xf32>
    %105 = vector.broadcast %104 : vector<16x1xf32> to vector<16x16xf32>
    %106 = arith.mulf %101, %105 : vector<16x16xf32>
    %cst_48 = arith.constant dense<0.000000e+00> : vector<16x32xf32>
    %107 = tpu.matmul %106, %88, %cst_48 {dimension_numbers = #tpu.dot_dimension_numbers<[1], [0], [0], [1], [0, 0, 1, 1], [], []>} : vector<16x16xf32>, vector<16x32xf32>, vector<16x32xf32> -> vector<16x32xf32>
    %c3 = arith.constant 3 : index
    %108 = memref.load %arg7[%c3] : memref<9xf32, #tpu.memory_space<smem>>
    %cst_49 = arith.constant dense<0.000000e+00> : vector<16x16xf32>
    %109 = tpu.matmul %87, %89, %cst_49 {dimension_numbers = #tpu.dot_dimension_numbers<[1], [1], [0], [0], [0, 0, 1, 0], [], []>} : vector<16x32xf32>, vector<16x32xf32>, vector<16x16xf32> -> vector<16x16xf32>
    %110 = vector.broadcast %108 : f32 to vector<16x16xf32>
    %111 = arith.mulf %109, %110 : vector<16x16xf32>
    %112 = arith.addf %111, %41 : vector<16x16xf32>
    %cst_50 = arith.constant dense<0xFF800000> : vector<16xf32>
    %113 = vector.multi_reduction <maximumf>, %112, %cst_50 [1] : vector<16x16xf32> to vector<16xf32>
    %114 = vector.shape_cast %113 : vector<16xf32> to vector<16x1xf32>
    %115 = vector.broadcast %114 : vector<16x1xf32> to vector<16x16xf32>
    %116 = arith.subf %112, %115 : vector<16x16xf32>
    %117 = math.exp %116 : vector<16x16xf32>
    %cst_51 = arith.constant dense<0.000000e+00> : vector<16xf32>
    %118 = vector.multi_reduction <add>, %117, %cst_51 [1] : vector<16x16xf32> to vector<16xf32>
    %119 = vector.shape_cast %118 : vector<16xf32> to vector<16x1xf32>
    %120 = arith.divf %47, %119 : vector<16x1xf32>
    %121 = vector.broadcast %120 : vector<16x1xf32> to vector<16x16xf32>
    %122 = arith.mulf %117, %121 : vector<16x16xf32>
    %cst_52 = arith.constant dense<0.000000e+00> : vector<16x32xf32>
    %123 = tpu.matmul %122, %91, %cst_52 {dimension_numbers = #tpu.dot_dimension_numbers<[1], [0], [0], [1], [0, 0, 1, 1], [], []>} : vector<16x16xf32>, vector<16x32xf32>, vector<16x32xf32> -> vector<16x32xf32>
    %c0_53 = arith.constant 0 : index
    %124 = memref.load %arg7[%c0_53] : memref<9xf32, #tpu.memory_space<smem>>
    %125 = arith.mulf %123, %123 : vector<16x32xf32>
    %126 = arith.mulf %123, %125 : vector<16x32xf32>
    %cst_54 = arith.constant 4.471500e-02 : f32
    %127 = vector.broadcast %cst_54 : f32 to vector<16x32xf32>
    %128 = arith.mulf %127, %126 : vector<16x32xf32>
    %129 = arith.addf %123, %128 : vector<16x32xf32>
    %cst_55 = arith.constant 0.797884583 : f32
    %130 = vector.broadcast %cst_55 : f32 to vector<16x32xf32>
    %131 = arith.mulf %130, %129 : vector<16x32xf32>
    %132 = math.tanh %131 : vector<16x32xf32>
    %cst_56 = arith.constant 1.000000e+00 : f32
    %133 = vector.broadcast %cst_56 : f32 to vector<16x32xf32>
    %134 = arith.addf %133, %132 : vector<16x32xf32>
    %cst_57 = arith.constant 5.000000e-01 : f32
    %135 = vector.broadcast %cst_57 : f32 to vector<16x32xf32>
    %136 = arith.mulf %135, %134 : vector<16x32xf32>
    %137 = arith.mulf %123, %136 : vector<16x32xf32>
    %c2_58 = arith.constant 2 : index
    %c0_59 = arith.constant 0 : index
    %c0_60 = arith.constant 0 : index
    %138 = vector.load %arg2[%c2_58, %c0_59, %c0_60] : memref<9x32x32xf32, #tpu.memory_space<vmem>>, vector<1x32x32xf32>
    %139 = vector.shape_cast %138 : vector<1x32x32xf32> to vector<32x32xf32>
    %cst_61 = arith.constant dense<0.000000e+00> : vector<16x32xf32>
    %140 = tpu.matmul %137, %139, %cst_61 {dimension_numbers = #tpu.dot_dimension_numbers<[1], [0], [0], [1], [0, 0, 1, 1], [], []>} : vector<16x32xf32>, vector<32x32xf32>, vector<16x32xf32> -> vector<16x32xf32>
    %c2_62 = arith.constant 2 : index
    %c0_63 = arith.constant 0 : index
    %141 = vector.load %arg3[%c2_62, %c0_63] : memref<7x32xf32, #tpu.memory_space<vmem>>, vector<1x32xf32>
    %142 = vector.shape_cast %141 : vector<1x32xf32> to vector<32xf32>
    %143 = vector.shape_cast %142 : vector<32xf32> to vector<1x32xf32>
    %144 = vector.broadcast %143 : vector<1x32xf32> to vector<16x32xf32>
    %145 = arith.addf %140, %144 : vector<16x32xf32>
    %146 = vector.broadcast %124 : f32 to vector<16x32xf32>
    %147 = arith.mulf %146, %145 : vector<16x32xf32>
    %cst_64 = arith.constant 1.000000e+00 : f32
    %148 = arith.subf %cst_64, %124 : f32
    %149 = vector.broadcast %148 : f32 to vector<16x32xf32>
    %150 = arith.mulf %149, %58 : vector<16x32xf32>
    %151 = arith.addf %147, %150 : vector<16x32xf32>
    %c1_65 = arith.constant 1 : index
    %152 = memref.load %arg7[%c1_65] : memref<9xf32, #tpu.memory_space<smem>>
    %153 = arith.mulf %107, %107 : vector<16x32xf32>
    %154 = arith.mulf %107, %153 : vector<16x32xf32>
    %cst_66 = arith.constant 4.471500e-02 : f32
    %155 = vector.broadcast %cst_66 : f32 to vector<16x32xf32>
    %156 = arith.mulf %155, %154 : vector<16x32xf32>
    %157 = arith.addf %107, %156 : vector<16x32xf32>
    %cst_67 = arith.constant 0.797884583 : f32
    %158 = vector.broadcast %cst_67 : f32 to vector<16x32xf32>
    %159 = arith.mulf %158, %157 : vector<16x32xf32>
    %160 = math.tanh %159 : vector<16x32xf32>
    %cst_68 = arith.constant 1.000000e+00 : f32
    %161 = vector.broadcast %cst_68 : f32 to vector<16x32xf32>
    %162 = arith.addf %161, %160 : vector<16x32xf32>
    %cst_69 = arith.constant 5.000000e-01 : f32
    %163 = vector.broadcast %cst_69 : f32 to vector<16x32xf32>
    %164 = arith.mulf %163, %162 : vector<16x32xf32>
    %165 = arith.mulf %107, %164 : vector<16x32xf32>
    %c3_70 = arith.constant 3 : index
    %c0_71 = arith.constant 0 : index
    %c0_72 = arith.constant 0 : index
    %166 = vector.load %arg2[%c3_70, %c0_71, %c0_72] : memref<9x32x32xf32, #tpu.memory_space<vmem>>, vector<1x32x32xf32>
    %167 = vector.shape_cast %166 : vector<1x32x32xf32> to vector<32x32xf32>
    %cst_73 = arith.constant dense<0.000000e+00> : vector<16x32xf32>
    %168 = tpu.matmul %165, %167, %cst_73 {dimension_numbers = #tpu.dot_dimension_numbers<[1], [0], [0], [1], [0, 0, 1, 1], [], []>} : vector<16x32xf32>, vector<32x32xf32>, vector<16x32xf32> -> vector<16x32xf32>
    %c3_74 = arith.constant 3 : index
    %c0_75 = arith.constant 0 : index
    %169 = vector.load %arg3[%c3_74, %c0_75] : memref<7x32xf32, #tpu.memory_space<vmem>>, vector<1x32xf32>
    %170 = vector.shape_cast %169 : vector<1x32xf32> to vector<32xf32>
    %171 = vector.shape_cast %170 : vector<32xf32> to vector<1x32xf32>
    %172 = vector.broadcast %171 : vector<1x32xf32> to vector<16x32xf32>
    %173 = arith.addf %168, %172 : vector<16x32xf32>
    %174 = vector.broadcast %152 : f32 to vector<16x32xf32>
    %175 = arith.mulf %174, %173 : vector<16x32xf32>
    %cst_76 = arith.constant 1.000000e+00 : f32
    %176 = arith.subf %cst_76, %152 : f32
    %177 = vector.broadcast %176 : f32 to vector<16x32xf32>
    %178 = arith.mulf %177, %69 : vector<16x32xf32>
    %179 = arith.addf %175, %178 : vector<16x32xf32>
    %c2_77 = arith.constant 2 : index
    %c0_78 = arith.constant 0 : index
    %c0_79 = arith.constant 0 : index
    %180 = vector.load %arg4[%c2_77, %c0_78, %c0_79] : memref<4x32x96xf32, #tpu.memory_space<vmem>>, vector<1x32x96xf32>
    %181 = vector.shape_cast %180 : vector<1x32x96xf32> to vector<32x96xf32>
    %cst_80 = arith.constant dense<0.000000e+00> : vector<16x96xf32>
    %182 = tpu.matmul %151, %181, %cst_80 {dimension_numbers = #tpu.dot_dimension_numbers<[1], [0], [0], [1], [0, 0, 1, 1], [], []>} : vector<16x32xf32>, vector<32x96xf32>, vector<16x96xf32> -> vector<16x96xf32>
    %c2_81 = arith.constant 2 : index
    %c0_82 = arith.constant 0 : index
    %183 = vector.load %arg5[%c2_81, %c0_82] : memref<4x96xf32, #tpu.memory_space<vmem>>, vector<1x96xf32>
    %184 = vector.shape_cast %183 : vector<1x96xf32> to vector<96xf32>
    %185 = vector.shape_cast %184 : vector<96xf32> to vector<1x96xf32>
    %186 = vector.broadcast %185 : vector<1x96xf32> to vector<16x96xf32>
    %187 = arith.addf %182, %186 : vector<16x96xf32>
    %c3_83 = arith.constant 3 : index
    %c0_84 = arith.constant 0 : index
    %c0_85 = arith.constant 0 : index
    %188 = vector.load %arg4[%c3_83, %c0_84, %c0_85] : memref<4x32x96xf32, #tpu.memory_space<vmem>>, vector<1x32x96xf32>
    %189 = vector.shape_cast %188 : vector<1x32x96xf32> to vector<32x96xf32>
    %cst_86 = arith.constant dense<0.000000e+00> : vector<16x96xf32>
    %190 = tpu.matmul %179, %189, %cst_86 {dimension_numbers = #tpu.dot_dimension_numbers<[1], [0], [0], [1], [0, 0, 1, 1], [], []>} : vector<16x32xf32>, vector<32x96xf32>, vector<16x96xf32> -> vector<16x96xf32>
    %c3_87 = arith.constant 3 : index
    %c0_88 = arith.constant 0 : index
    %191 = vector.load %arg5[%c3_87, %c0_88] : memref<4x96xf32, #tpu.memory_space<vmem>>, vector<1x96xf32>
    %192 = vector.shape_cast %191 : vector<1x96xf32> to vector<96xf32>
    %193 = vector.shape_cast %192 : vector<96xf32> to vector<1x96xf32>
    %194 = vector.broadcast %193 : vector<1x96xf32> to vector<16x96xf32>
    %195 = arith.addf %190, %194 : vector<16x96xf32>
    %196 = vector.extract_strided_slice %187 {offsets = [0, 32], sizes = [16, 32], strides = [1, 1]} : vector<16x96xf32> to vector<16x32xf32>
    %197 = vector.extract_strided_slice %195 {offsets = [0, 0], sizes = [16, 32], strides = [1, 1]} : vector<16x96xf32> to vector<16x32xf32>
    %198 = vector.extract_strided_slice %195 {offsets = [0, 64], sizes = [16, 32], strides = [1, 1]} : vector<16x96xf32> to vector<16x32xf32>
    %c7 = arith.constant 7 : index
    %199 = memref.load %arg7[%c7] : memref<9xf32, #tpu.memory_space<smem>>
    %cst_89 = arith.constant dense<0.000000e+00> : vector<16x16xf32>
    %200 = tpu.matmul %196, %197, %cst_89 {dimension_numbers = #tpu.dot_dimension_numbers<[1], [1], [0], [0], [0, 0, 1, 0], [], []>} : vector<16x32xf32>, vector<16x32xf32>, vector<16x16xf32> -> vector<16x16xf32>
    %201 = vector.broadcast %199 : f32 to vector<16x16xf32>
    %202 = arith.mulf %200, %201 : vector<16x16xf32>
    %203 = arith.addf %202, %41 : vector<16x16xf32>
    %cst_90 = arith.constant dense<0xFF800000> : vector<16xf32>
    %204 = vector.multi_reduction <maximumf>, %203, %cst_90 [1] : vector<16x16xf32> to vector<16xf32>
    %205 = vector.shape_cast %204 : vector<16xf32> to vector<16x1xf32>
    %206 = vector.broadcast %205 : vector<16x1xf32> to vector<16x16xf32>
    %207 = arith.subf %203, %206 : vector<16x16xf32>
    %208 = math.exp %207 : vector<16x16xf32>
    %cst_91 = arith.constant dense<0.000000e+00> : vector<16xf32>
    %209 = vector.multi_reduction <add>, %208, %cst_91 [1] : vector<16x16xf32> to vector<16xf32>
    %210 = vector.shape_cast %209 : vector<16xf32> to vector<16x1xf32>
    %211 = arith.divf %47, %210 : vector<16x1xf32>
    %212 = vector.broadcast %211 : vector<16x1xf32> to vector<16x16xf32>
    %213 = arith.mulf %208, %212 : vector<16x16xf32>
    %cst_92 = arith.constant dense<0.000000e+00> : vector<16x32xf32>
    %214 = tpu.matmul %213, %198, %cst_92 {dimension_numbers = #tpu.dot_dimension_numbers<[1], [0], [0], [1], [0, 0, 1, 1], [], []>} : vector<16x16xf32>, vector<16x32xf32>, vector<16x32xf32> -> vector<16x32xf32>
    %c4 = arith.constant 4 : index
    %215 = memref.load %arg7[%c4] : memref<9xf32, #tpu.memory_space<smem>>
    %216 = arith.mulf %214, %214 : vector<16x32xf32>
    %217 = arith.mulf %214, %216 : vector<16x32xf32>
    %cst_93 = arith.constant 4.471500e-02 : f32
    %218 = vector.broadcast %cst_93 : f32 to vector<16x32xf32>
    %219 = arith.mulf %218, %217 : vector<16x32xf32>
    %220 = arith.addf %214, %219 : vector<16x32xf32>
    %cst_94 = arith.constant 0.797884583 : f32
    %221 = vector.broadcast %cst_94 : f32 to vector<16x32xf32>
    %222 = arith.mulf %221, %220 : vector<16x32xf32>
    %223 = math.tanh %222 : vector<16x32xf32>
    %cst_95 = arith.constant 1.000000e+00 : f32
    %224 = vector.broadcast %cst_95 : f32 to vector<16x32xf32>
    %225 = arith.addf %224, %223 : vector<16x32xf32>
    %cst_96 = arith.constant 5.000000e-01 : f32
    %226 = vector.broadcast %cst_96 : f32 to vector<16x32xf32>
    %227 = arith.mulf %226, %225 : vector<16x32xf32>
    %228 = arith.mulf %214, %227 : vector<16x32xf32>
    %c4_97 = arith.constant 4 : index
    %c0_98 = arith.constant 0 : index
    %c0_99 = arith.constant 0 : index
    %229 = vector.load %arg2[%c4_97, %c0_98, %c0_99] : memref<9x32x32xf32, #tpu.memory_space<vmem>>, vector<1x32x32xf32>
    %230 = vector.shape_cast %229 : vector<1x32x32xf32> to vector<32x32xf32>
    %cst_100 = arith.constant dense<0.000000e+00> : vector<16x32xf32>
    %231 = tpu.matmul %228, %230, %cst_100 {dimension_numbers = #tpu.dot_dimension_numbers<[1], [0], [0], [1], [0, 0, 1, 1], [], []>} : vector<16x32xf32>, vector<32x32xf32>, vector<16x32xf32> -> vector<16x32xf32>
    %c4_101 = arith.constant 4 : index
    %c0_102 = arith.constant 0 : index
    %232 = vector.load %arg3[%c4_101, %c0_102] : memref<7x32xf32, #tpu.memory_space<vmem>>, vector<1x32xf32>
    %233 = vector.shape_cast %232 : vector<1x32xf32> to vector<32xf32>
    %234 = vector.shape_cast %233 : vector<32xf32> to vector<1x32xf32>
    %235 = vector.broadcast %234 : vector<1x32xf32> to vector<16x32xf32>
    %236 = arith.addf %231, %235 : vector<16x32xf32>
    %237 = vector.broadcast %215 : f32 to vector<16x32xf32>
    %238 = arith.mulf %237, %236 : vector<16x32xf32>
    %cst_103 = arith.constant 1.000000e+00 : f32
    %239 = arith.subf %cst_103, %215 : f32
    %240 = vector.broadcast %239 : f32 to vector<16x32xf32>
    %241 = arith.mulf %240, %151 : vector<16x32xf32>
    %242 = arith.addf %238, %241 : vector<16x32xf32>
    %243 = tpu.iota {dimensions = array<i32: 1>} : vector<16x16xi32>
    %c0_104 = arith.constant 0 : index
    %c0_105 = arith.constant 0 : index
    %244 = vector.load %arg6[%c0_104, %c0_105] : memref<64x2xi32, #tpu.memory_space<vmem>>, vector<16x1xi32>
    %245 = vector.broadcast %244 : vector<16x1xi32> to vector<16x16xi32>
    %246 = arith.cmpi eq, %243, %245 : vector<16x16xi32>
    %247 = arith.extui %246 : vector<16x16xi1> to vector<16x16xi32>
    %248 = arith.sitofp %247 : vector<16x16xi32> to vector<16x16xf32>
    %cst_106 = arith.constant dense<0.000000e+00> : vector<16x32xf32>
    %249 = tpu.matmul %248, %242, %cst_106 {dimension_numbers = #tpu.dot_dimension_numbers<[1], [0], [0], [1], [0, 0, 1, 1], [], []>} : vector<16x16xf32>, vector<16x32xf32>, vector<16x32xf32> -> vector<16x32xf32>
    %250 = vector.extract_strided_slice %249 {offsets = [0, 0], sizes = [8, 32], strides = [1, 1]} : vector<16x32xf32> to vector<8x32xf32>
    %c6 = arith.constant 6 : index
    %c0_107 = arith.constant 0 : index
    %c0_108 = arith.constant 0 : index
    %251 = vector.load %arg2[%c6, %c0_107, %c0_108] : memref<9x32x32xf32, #tpu.memory_space<vmem>>, vector<1x32x32xf32>
    %252 = vector.shape_cast %251 : vector<1x32x32xf32> to vector<32x32xf32>
    %cst_109 = arith.constant dense<0.000000e+00> : vector<8x32xf32>
    %253 = tpu.matmul %250, %252, %cst_109 {dimension_numbers = #tpu.dot_dimension_numbers<[1], [0], [0], [1], [0, 0, 1, 1], [], []>} : vector<8x32xf32>, vector<32x32xf32>, vector<8x32xf32> -> vector<8x32xf32>
    %254 = vector.extract_strided_slice %249 {offsets = [8, 0], sizes = [8, 32], strides = [1, 1]} : vector<16x32xf32> to vector<8x32xf32>
    %c7_110 = arith.constant 7 : index
    %c0_111 = arith.constant 0 : index
    %c0_112 = arith.constant 0 : index
    %255 = vector.load %arg2[%c7_110, %c0_111, %c0_112] : memref<9x32x32xf32, #tpu.memory_space<vmem>>, vector<1x32x32xf32>
    %256 = vector.shape_cast %255 : vector<1x32x32xf32> to vector<32x32xf32>
    %cst_113 = arith.constant dense<0.000000e+00> : vector<8x32xf32>
    %257 = tpu.matmul %254, %256, %cst_113 {dimension_numbers = #tpu.dot_dimension_numbers<[1], [0], [0], [1], [0, 0, 1, 1], [], []>} : vector<8x32xf32>, vector<32x32xf32>, vector<8x32xf32> -> vector<8x32xf32>
    %258 = arith.addf %253, %257 : vector<8x32xf32>
    %c6_114 = arith.constant 6 : index
    %c0_115 = arith.constant 0 : index
    %259 = vector.load %arg3[%c6_114, %c0_115] : memref<7x32xf32, #tpu.memory_space<vmem>>, vector<1x32xf32>
    %260 = vector.shape_cast %259 : vector<1x32xf32> to vector<32xf32>
    %261 = vector.shape_cast %260 : vector<32xf32> to vector<1x32xf32>
    %262 = vector.broadcast %261 : vector<1x32xf32> to vector<8x32xf32>
    %263 = arith.addf %258, %262 : vector<8x32xf32>
    %cst_116 = arith.constant 0.000000e+00 : f32
    %264 = vector.broadcast %cst_116 : f32 to vector<8x32xf32>
    %265 = arith.maximumf %263, %264 : vector<8x32xf32>
    %c8 = arith.constant 8 : index
    %c0_117 = arith.constant 0 : index
    %c0_118 = arith.constant 0 : index
    %266 = vector.load %arg2[%c8, %c0_117, %c0_118] : memref<9x32x32xf32, #tpu.memory_space<vmem>>, vector<1x32x32xf32>
    %267 = vector.shape_cast %266 : vector<1x32x32xf32> to vector<32x32xf32>
    %268 = vector.extract_strided_slice %267 {offsets = [0, 0], sizes = [32, 1], strides = [1, 1]} : vector<32x32xf32> to vector<32x1xf32>
    %cst_119 = arith.constant dense<0.000000e+00> : vector<1x8xf32>
    %269 = tpu.matmul %268, %265, %cst_119 {dimension_numbers = #tpu.dot_dimension_numbers<[0], [1], [1], [0], [0, 1, 1, 0], [], []>} : vector<32x1xf32>, vector<8x32xf32>, vector<1x8xf32> -> vector<1x8xf32>
    %c8_120 = arith.constant 8 : index
    %270 = memref.load %arg7[%c8_120] : memref<9xf32, #tpu.memory_space<smem>>
    %271 = vector.broadcast %270 : f32 to vector<1x8xf32>
    %272 = arith.addf %269, %271 : vector<1x8xf32>
    %c0_121 = arith.constant 0 : index
    %c0_122 = arith.constant 0 : index
    %273 = vector.load %arg8[%c0_121, %c0_122] : memref<1x8xf32, #tpu.memory_space<vmem>>, vector<1x8xf32>
    tpu.vector_store %arg8[%c0_121, %c0_122], %272 {strides = array<i32>} : memref<1x8xf32, #tpu.memory_space<vmem>>, vector<1x8xf32>,
    return
  }
}

</mosaic_0001>

<bundles_post_ra>
// kernel: model_forward.1
= control target key start
LH: loop header
LB: loop body
LE: loop exit
PB: predicated region body
PF: predicated region fallthrough
CT: control target
= control target key end

     0   :  { %13 = vsyncpa [#allocation3], 0  ;;  %s1896_s0 = inlined_call_operand.vmem [shape: f32[16,32], index: 0, kind: input, shape index: {}]   ;;  %s1897_s1 = inlined_call_operand.vmem [shape: f32[16,32], index: 1, kind: input, shape index: {}]   ;;  %s1898_s2 = inlined_call_operand.hbm [shape: f32[9,32,32], index: 2, kind: input, shape index: {}]   ;;  %s1899_s3 = inlined_call_operand.vmem [shape: f32[7,32], index: 3, kind: input, shape index: {}]   ;;  %s1900_s4 = inlined_call_operand.hbm [shape: f32[4,32,96], index: 4, kind: input, shape index: {}]   ;;  %s1901_s5 = inlined_call_operand.vmem [shape: f32[4,96], index: 5, kind: input, shape index: {}]   ;;  %s1902_s6 = inlined_call_operand.vmem [shape: s32[64,2], index: 6, kind: input, shape index: {}]   ;;  %s1903_s7 = inlined_call_operand.vmem [shape: f32[9], index: 7, kind: input, shape index: {}]   ;;  %s1904_s8 = inlined_call_operand.hbm [shape: f32[1,8], index: 8, kind: output, shape index: {}]  }
   0x1   :  { %14 = vsyncpa [#allocation7], 0 }
   0x2   :  { %15 = vsyncpa [#allocation5], 0 }
   0x3   :  { %16 = vsyncpa [#allocation4], 0  ;;  %s25_s29 = sshll.u32 %s1898_s2, 4  ;;  %s1549_s30 = smov [#allocation2]   ;;  %s26_s29 = int_to_ptr.hbm [resolvable:$true] %s25_s29 }
   0x4   :  { %s27_s9 = sshll.u32 %s1549_s30, 4  ;;  %s40_s12 = sshll.u32 %s1900_s4, 4  ;;  %s28_s9 = int_to_ptr.vmem [resolvable:$true] %s27_s9  ;;  %s41_s12 = int_to_ptr.hbm [resolvable:$true] %s40_s12 }
   0x5   :  { %s1550_s13 = smov 128   ;;  %s1551_s14 = smov 8  }
   0x6   :  { %33 = dma.hbm_to_vmem [thread:$0]  %s26_s29, 4608, %s28_s9, [#allocation3], %s1550_s13, %s1550_s13, %s1551_s14  }
   0x7   :  { %s1552_s15 = smov [#allocation6]   ;;  %s58_s19 = sshll.u32 %s1903_s7, 4  ;;  %s59_s19 = int_to_ptr.vmem [resolvable:$true] %s58_s19 }
   0x8   :  { %s42_s16 = sshll.u32 %s1552_s15, 4  ;;  %s1553_s2 = smov [#allocation8]   ;;  %s43_s16 = int_to_ptr.vmem [resolvable:$true] %s42_s16 }
   0x9   :  { %48 = dma.hbm_to_vmem [thread:$0]  %s41_s12, 2048, %s43_s16, [#allocation7], %s1550_s13, %s1550_s13, %s1551_s14  }
   0xa   :  { %61 = dma.vmem_to_smem %s59_s19, 16, %s1553_s2, [#allocation5]  }
   0xb   :  { %1541 = dma.done.wait [#allocation3], 4608  }
   0xc   :  { %1542 = vsyncadd [#allocation3], 4294962688 }
   0xd   :  { %1543 = dma.done.wait [#allocation7], 2048  }
   0xe   :  { %1544 = vsyncadd [#allocation7], 4294965248 }
   0xf   :  { %1545 = dma.done.wait [#allocation5], 16  }
  0x10   :  { %1546 = vsyncadd [#allocation5], 4294967280 }
  0x11   :  { %74 = sfence }
  0x12   :  { %v77_v0 = vld [vmem:[%s1902_s6 + $0x20] sm:$0xff]  ;;  %v75_v1 = vld [vmem:[%s1902_s6 + $0x10] sm:$0xff]  ;;  %v1554_v2 = vmov 1   ;;  %v195_v4 = vld [vmem:[%s1902_s6 + $0x28] sm:$0xff]  ;;  %v1555_v6 = vmov 0   ;;  %v78_v9 = vlaneseq  ;;  %v1556_v17 = vmov 1.0  }
  0x13   :  { %1391 = vset.pattern.permute.xlu1 %v1554_v2  ;;  %1390 = vset.pattern.permute.xlu0 %v1554_v2  ;;  %v196_v3 = vld [vmem:[%s1902_s6 + $0x30] sm:$0xff]  ;;  %v76_v5 = vld [vmem:[%s1902_s6 + $0x18] sm:$0xff]  ;;  %v314_v16 = vld [vmem:[#allocation2 + $0x8] sm:$0xff]  ;;  %vm319_vm1 = vcmask 261120   ;;  %v1557_v24 = vmov 0.0   ;;  %vm148_vm13 = vcmask 195584  }
  0x14   :  { %105 = vperm.xlu1 %1391, %v77_v0   ;;  %99 = vperm.xlu0 %1390, %v75_v1   ;;  %v197_v7 = vld [vmem:[%s1902_s6 + $0x38] sm:$0xff]  ;;  %v1634_v10 = vand.u32 127, %v78_v9  ;;  %v315_v12 = vld [vmem:[#allocation2 + $0x10] sm:$0xff]  ;;  %v355_v18 = vld [vmem:[#allocation2 + $0x28] sm:$0xff]  ;;  %s1558_s20 = smov 96   ;;  %s1342_s21 = sld [smem:[#allocation8 + $0x3]] }
  0x15   :  { %1392 = vset.pattern.permute.xlu2 %v1554_v2  ;;  %v316_v11 = vld [vmem:[#allocation2 + $0x18] sm:$0xff]  ;;  %v356_v15 = vld [vmem:[#allocation2 + $0x30] sm:$0xff]  ;;  %v313_v19 = vld [vmem:[#allocation2] sm:$0xff]  ;;  %vm182_vm15 = vcmask 130048   ;;  %s1335_s22 = sld [smem:[#allocation8 + $0x2]]  ;;  %s1560_s7 = smov 64  }
  0x16   :  { %220 = vperm.xlu2 %1392, %v196_v3   ;;  %338 = vmatpush.msra.mxu2 %v316_v11  ;;  %v357_v14 = vld [vmem:[#allocation2 + $0x38] sm:$0xff]  ;;  %v311_v22 = vld [vmem:[%s1896_s0] sm:$0xff]  ;;  %v312_v29 = vld [vmem:[%s1896_s0 + $0x8] sm:$0xff]  ;;  %s1816_s23 = sld [smem:[#allocation8]]  ;;  %s1561_s4 = smov [#allocation9]  }
  0x17   :  { %378 = vmatpush.msra.mxu3 %v357_v14  ;;  %v354_v23 = vld [vmem:[#allocation2 + $0x20] sm:$0xff]  ;;  %v352_v32 = vld [vmem:[%s1897_s1 + $0x8] sm:$0xff]  ;;  %v394_v42 = vld [vmem:[#allocation6 + $0x18] sm:$0xff]  ;;  %s1351_s27 = sld [smem:[#allocation8 + $0x1]] }
  0x18   :  { %339 = vmatpush.msra.mxu2 %v315_v12  ;;  %v351_v26 = vld [vmem:[%s1897_s1] sm:$0xff]  ;;  %v393_v43 = vld [vmem:[#allocation6 + $0x10] sm:$0xff]  ;;  %v430_v44 = vld [vmem:[#allocation6 + $0x38] sm:$0xff]  ;;  %s1358_s13 = sld [smem:[#allocation8 + $0x7]] }
  0x19   :  { %379 = vmatpush.msra.mxu3 %v356_v15  ;;  %v392_v45 = vld [vmem:[#allocation6 + $0x8] sm:$0xff]  ;;  %v429_v46 = vld [vmem:[#allocation6 + $0x30] sm:$0xff]  ;;  %v391_v47 = vld [vmem:[#allocation6] sm:$0xff]  ;;  %s1374_s2 = sld [smem:[#allocation8 + $0x8]] }
  0x1a   :  { %340 = vmatpush.msra.mxu2 %v314_v16  ;;  %v428_v48 = vld [vmem:[#allocation6 + $0x28] sm:$0xff]  ;;  %v427_v49 = vld [vmem:[#allocation6 + $0x20] sm:$0xff] }
  0x1b   :  { %380 = vmatpush.msra.mxu3 %v355_v18  ;;  %v1412_v53 = vld [vmem:[%s1899_s3 + $0x1] ss:$0 sm:$0xff]  ;;  %v1411_v55 = vld [vmem:[%s1899_s3] ss:$0 sm:$0xff] }
  0x1c   :  { %217 = vperm.xlu1 %1391, %v195_v4   ;;  %102 = vperm.xlu0 %1390, %v76_v5   ;;  %s776_s24 = ssub.f32 1.0, %s1816_s23 }
  0x1d   :  { %341 = vmatpush.msra.mxu2 %v313_v19  ;;  %381 = vmatpush.msra.mxu3 %v354_v23  ;;  %s840_s28 = ssub.f32 1.0, %s1351_s27 }
  0x1e   :  { %1393 = vset.pattern.permute.xlu2 %v1555_v6  ;;  %1327 = vmatmul.msk.f32.vlgmr.msra.gmra.mxu2 %vm319_vm1, %v311_v22 }
  0x1f   :  { %87 = vperm.xlu2 %1393, %v77_v0   ;;  %1329 = vmatmul.msk.f32.vlgmr.msra.gmra.mxu3 %vm319_vm1, %v351_v26  ;;  %v628_v26 = vstv %s1342_s21 }
  0x24   :  { %223 = vperm.xlu0 %1390, %v197_v7   ;;  %1394 = vset.pattern.permute.xlu1 %v1555_v6 }
  0x25   :  { %84 = vperm.xlu1 %1394, %v76_v5  }
  0x26   :  { %1328 = vmatmul.msk.f32.gmra.mxu2 %vm319_vm1, %v312_v29  ;;  %v1559_v29 = vmov -1e+30  }
  0x27   :  { %81 = vperm.xlu2 %1393, %v75_v1   ;;  %1330 = vmatmul.msk.f32.gmra.mxu3 %vm319_vm1, %v352_v32 }
  0x2c   :  { %1395 = vset.pattern.permute.xlu0 %v1555_v6 }
  0x2d   :  { %205 = vperm.xlu0 %1395, %v197_v7   ;;  %202 = vperm.xlu1 %1394, %v196_v3  }
  0x2f   :  { %199 = vperm.xlu2 %1393, %v195_v4  }
  0x70   :  { %v221_v8 = vpop.permute.xlu2 %220 }
  0x71   :  { %vm226_vm6 = vcmp.eq.s32.totalorder %v1634_v10, %v221_v8  ;;  %v1413_v8 = vld [vmem:[%s1901_s5] ss:$0 sm:$0xff] }
  0x72   :  { %v1318_v35 = vsel %vm226_vm6, 1.0, %v1557_v24 }
  0x79   :  { %v88_v13 = vpop.permute.xlu2 %87 }
  0x7a   :  { %vm91_vm0 = vcmp.eq.s32.totalorder %v1634_v10, %v88_v13  ;;  %v1414_v13 = vld [vmem:[%s1901_s5 + $0x1] ss:$0 sm:$0xff] }
  0x7b   :  { %1307 = vmatpush.msk.msra.mxu0 %vm91_vm0, %v1556_v17 }
  0x81   :  { %v82_v33 = vpop.permute.xlu2 %81 }
  0x82   :  { %vm89_vm8 = vcmp.eq.s32.totalorder %v1634_v10, %v82_v33 }
  0x86   :  { %v106_v20 = vpop.permute.xlu1 %105  ;;  %v100_v21 = vpop.permute.xlu0 %99 }
  0x87   :  { %vm107_vm2 = vcmp.eq.s32.totalorder %v1634_v10, %v100_v21  ;;  %vm109_vm5 = vcmp.eq.s32.totalorder %v1634_v10, %v106_v20 }
  0x88   :  { %v1304_v25 = vsel %vm107_vm2, 1.0, %v1557_v24  ;;  %v1306_v34 = vsel %vm109_vm5, 1.0, %v1557_v24 }
  0x89   :  { %116 = vxpose.xlu1.b32.start [1/3] (short) (narrow) %v1304_v25, 16  ;;  %v200_v38 = vpop.permute.xlu2 %199 }
  0x8a   :  { %vm207_vm12 = vcmp.eq.s32.totalorder %v1634_v10, %v200_v38 }
  0x8e   :  { %v218_v27 = vpop.permute.xlu1 %217  ;;  %v103_v28 = vpop.permute.xlu0 %102 }
  0x8f   :  { %vm225_vm3 = vcmp.eq.s32.totalorder %v1634_v10, %v218_v27  ;;  %vm108_vm4 = vcmp.eq.s32.totalorder %v1634_v10, %v103_v28 }
  0x90   :  { %v1317_v30 = vsel %vm225_vm3, 1.0, %v1557_v24  ;;  %v1305_v31 = vsel %vm108_vm4, 1.0, %v1557_v24 }
  0x91   :  { %234 = vxpose.xlu2.b32.start [1/3] (short) (narrow) %v1317_v30, 16  ;;  %117 = vxpose.xlu1.b32.cont [2/3] (short) (narrow) %v1305_v31, 16 }
  0x96   :  { %v224_v36 = vpop.permute.xlu0 %223 }
  0x97   :  { %v85_v37 = vpop.permute.xlu1 %84  ;;  %vm227_vm9 = vcmp.eq.s32.totalorder %v1634_v10, %v224_v36 }
  0x98   :  { %vm90_vm7 = vcmp.eq.s32.totalorder %v1634_v10, %v85_v37  ;;  %v1319_v41 = vsel %vm227_vm9, 1.0, %v1557_v24 }
  0x99   :  { %235 = vxpose.xlu2.b32.cont [2/3] (short) (narrow) %v1318_v35, 16  ;;  %118 = vxpose.xlu1.b32.end [3/3] (short) (narrow) %v1306_v34, 16 }
  0x9a   :  { %1308 = vmatpush.msk.msra.mxu0 %vm90_vm7, %v1556_v17 }
  0x9c   :  { %1309 = vmatpush.msk.msra.mxu0 %vm89_vm8, %v1556_v17 }
  0x9e   :  { %415 = vmatpush.msrb.mxu0 %v394_v42 }
  0x9f   :  { %v206_v39 = vpop.permute.xlu0 %205  ;;  %v203_v40 = vpop.permute.xlu1 %202 }
  0xa0   :  { %vm208_vm10 = vcmp.eq.s32.totalorder %v1634_v10, %v203_v40  ;;  %vm209_vm11 = vcmp.eq.s32.totalorder %v1634_v10, %v206_v39  ;;  %416 = vmatpush.msrb.mxu0 %v393_v43  ;;  %v502_v39 = vstv %s1335_s22 }
  0xa1   :  { %236 = vxpose.xlu2.b32.end [3/3] (short) (narrow) %v1319_v41, 16  ;;  %1320 = vmatpush.msk.msra.mxu1 %vm209_vm11, %v1556_v17  ;;  %v343_v54 = vpop.f32.mrf.mxu2 }
  0xa2   :  { %417 = vmatpush.msrb.mxu0 %v392_v45  ;;  %v383_v52 = vpop.f32.mrf.mxu3  ;;  %v1678_v59 = vadd.f32 %v1411_v55, %v343_v54 }
  0xa3   :  { %1321 = vmatpush.msk.msra.mxu1 %vm208_vm10, %v1556_v17  ;;  %v1676_v57 = vadd.f32 %v1412_v53, %v383_v52 }
  0xa4   :  { %418 = vmatpush.msrb.mxu0 %v391_v47  ;;  %v349_v62 = vmax.f32 %v1678_v59, 0.0 }
  0xa5   :  { %1322 = vmatpush.msk.msra.mxu1 %vm207_vm12, %v1556_v17  ;;  %v389_v60 = vmax.f32 %v1676_v57, 0.0 }
  0xa7   :  { %451 = vmatpush.msrb.mxu1 %v430_v44 }
  0xa9   :  { %452 = vmatpush.msrb.mxu1 %v429_v46  ;;  %v346_v63 = vpop.f32.mrf.mxu2 }
  0xaa   :  { %v386_v61 = vpop.f32.mrf.mxu3  ;;  %v1690_v1 = vadd.f32 %v1411_v55, %v346_v63 }
  0xab   :  { %453 = vmatpush.msrb.mxu1 %v428_v48  ;;  %v1685_v0 = vadd.f32 %v1412_v53, %v386_v61 }
  0xac   :  { %v350_v3 = vmax.f32 %v1690_v1, 0.0  ;;  %v1418_v1 = vld [vmem:[%s1901_s5 + $0x3] ss:$0 sm:$0xff] }
  0xad   :  { %454 = vmatpush.msrb.mxu1 %v427_v49  ;;  %v390_v2 = vmax.f32 %v1685_v0, 0.0  ;;  %v1417_v0 = vld [vmem:[%s1901_s5 + $0x2] ss:$0 sm:$0xff] }
 0x12a   :  { %v250_v50 = vpop.trf.xlu2 }
 0x12b   :  { %1323 = vmatmul.msk.f32.vlgmr.msra.gmra.mxu1 %vm148_vm13, %v250_v50 }
 0x12d   :  { %v132_v51 = vpop.trf.xlu1 }
 0x12e   :  { %1310 = vmatmul.msk.f32.vlgmr.msra.gmra.mxu0 %vm148_vm13, %v132_v51 }
 0x132   :  { %v251_v56 = vpop.trf.xlu2 }
 0x133   :  { %1324 = vmatmul.msk.f32.gmra.mxu1 %vm148_vm13, %v251_v56 }
 0x135   :  { %v133_v58 = vpop.trf.xlu1 }
 0x136   :  { %1311 = vmatmul.msk.f32.gmra.mxu0 %vm148_vm13, %v133_v58 }
 0x13b   :  { %1333 = vmatmul.msk.f32.vlgmr.msrb.gmra.mxu1 %vm319_vm1, %v389_v60 }
 0x13e   :  { %1331 = vmatmul.msk.f32.vlgmr.msrb.gmra.mxu0 %vm319_vm1, %v349_v62 }
 0x143   :  { %1334 = vmatmul.msk.f32.gmra.mxu1 %vm319_vm1, %v390_v2 }
 0x146   :  { %1332 = vmatmul.msk.f32.gmra.mxu0 %vm319_vm1, %v350_v3 }
 0x1a8   :  { %v289_v4 = vpop.f32.mrf.mxu1 }
 0x1a9   :  { %vm295_vm14 = vcmp.gt.f32.partialorder %v289_v4, 0.5  ;;  %v299_v37 = vsel %vm182_vm15, %v289_v4, -inf }
 0x1aa   :  { %v1742_v30 = vsel %vm295_vm14, 0.0, %v1559_v29 }
 0x1ab   :  { %v172_v5 = vpop.f32.mrf.mxu0 }
 0x1ac   :  { %vm178_vm2 = vcmp.gt.f32.partialorder %v172_v5, 0.5  ;;  %v183_v40 = vsel %vm182_vm15, %v172_v5, -inf }
 0x1ad   :  { %v180_v43 = vsel %vm178_vm2, 0.0, %v1559_v29 }
 0x1b0   :  { %v1700_v6 = vpop.f32.mrf.mxu1 }
 0x1b1   :  { %vm296_vm0 = vcmp.gt.f32.partialorder %v1700_v6, 0.5 }
 0x1b2   :  { %v1747_v35 = vsel %vm296_vm0, 0.0, %v1559_v29 }
 0x1b3   :  { %v1702_v7 = vpop.f32.mrf.mxu0 }
 0x1b4   :  { %vm179_vm3 = vcmp.gt.f32.partialorder %v1702_v7, 0.5  ;;  %v186_v46 = vsel %vm182_vm15, %v1702_v7, -inf }
 0x1b5   :  { %v181_v49 = vsel %vm179_vm3, 0.0, %v1559_v29 }
 0x1b8   :  { %v456_v9 = vpop.f32.mrf.mxu1 }
 0x1b9   :  { %v1714_v14 = vadd.f32 %v1414_v13, %v456_v9 }
 0x1bb   :  { %v420_v11 = vpop.f32.mrf.mxu0 }
 0x1bc   :  { %v1707_v12 = vadd.f32 %v1413_v8, %v420_v11 }
 0x1be   :  { %593 = vrot.lane.b32.xlu0 %v1707_v12, %s1558_s20 }
 0x1c0   :  { %v459_v15 = vpop.f32.mrf.mxu1 }
 0x1c1   :  { %v1716_v16 = vadd.f32 %v1414_v13, %v459_v15 }
 0x1c3   :  { %v423_v17 = vpop.f32.mrf.mxu0  ;;  %1343 = vmatpush.xpose.msk.msra.mxu0 %vm319_vm1, %v1716_v16  ;;  %v1396_v18 = vpack.i.bf16 %v1714_v14, %v1716_v16 }
 0x1c4   :  { %v1722_v19 = vadd.f32 %v1413_v8, %v423_v17 }
 0x1c6   :  { %1336 = vmatpush.xpose.msk.msrb.mxu2 %vm319_vm1, %v1722_v19  ;;  %595 = vrot.lane.b32.xlu0 %v1722_v19, %s1558_s20  ;;  %v1401_v20 = vpack.i.bf16 %v1707_v12, %v1722_v19 }
 0x1c7   :  { %1344 = vmatpush.xpose.msk.msra.mxu0 %vm319_vm1, %v1714_v14 }
 0x1ca   :  { %1337 = vmatpush.xpose.msk.msrb.mxu2 %vm319_vm1, %v1707_v12 }
 0x1ce   :  { %465 = vrot.lane.b32.xlu0 %v1714_v14, %s1558_s20 }
 0x1d6   :  { %467 = vrot.lane.b32.xlu0 %v1716_v16, %s1558_s20 }
 0x230   :  { %v594_v21 = vpop.permute.xlu0 %593 }
 0x231   :  { %1345 = vmatmul.msk.f32.vlgmr.msra.gmra.mxu0 %vm319_vm1, %v594_v21 }
 0x238   :  { %v596_v22 = vpop.permute.xlu0 %595 }
 0x239   :  { %1346 = vmatmul.msk.f32.gmra.mxu0 %vm319_vm1, %v596_v22 }
 0x240   :  { %v466_v23 = vpop.permute.xlu0 %465 }
 0x241   :  { %1338 = vmatmul.msk.f32.vlgmr.msrb.gmra.mxu2 %vm319_vm1, %v466_v23 }
 0x248   :  { %v468_v25 = vpop.permute.xlu0 %467 }
 0x249   :  { %1339 = vmatmul.msk.f32.gmra.mxu2 %vm319_vm1, %v468_v25 }
 0x2ae   :  { %v622_v27 = vpop.f32.mrf.mxu0 }
 0x2af   :  { %v629_v28 = vmul.f32 %v628_v26, %v622_v27 }
 0x2b1   :  { %v631_v31 = vadd.f32 %v629_v28, %v1742_v30 }
 0x2b3   :  { %v633_v32 = vsel %vm182_vm15, %v631_v31, -inf }
 0x2b4   :  { %634 = vmax.xlane.f32.xlu0 %v633_v32 }
 0x2b6   :  { %v625_v33 = vpop.f32.mrf.mxu0 }
 0x2b7   :  { %v630_v34 = vmul.f32 %v628_v26, %v625_v33  ;;  %v302_v26 = vsel %vm182_vm15, %v1700_v6, -inf }
 0x2b9   :  { %v632_v36 = vadd.f32 %v630_v34, %v1747_v35 }
 0x2bb   :  { %v636_v38 = vsel %vm182_vm15, %v632_v36, -inf }
 0x2bc   :  { %300 = vmax.xlane.f32.xlu0 %v299_v37  ;;  %637 = vmax.xlane.f32.xlu2 %v636_v38 }
 0x2c4   :  { %184 = vmax.xlane.f32.xlu2 %v183_v40  ;;  %v496_v41 = vpop.f32.mrf.mxu2 }
 0x2c5   :  { %v503_v42 = vmul.f32 %v502_v39, %v496_v41 }
 0x2c7   :  { %v505_v44 = vadd.f32 %v503_v42, %v180_v43 }
 0x2c9   :  { %v507_v45 = vsel %vm182_vm15, %v505_v44, -inf }
 0x2ca   :  { %508 = vmax.xlane.f32.xlu1 %v507_v45 }
 0x2cc   :  { %187 = vmax.xlane.f32.xlu2 %v186_v46  ;;  %v499_v47 = vpop.f32.mrf.mxu2 }
 0x2cd   :  { %v504_v48 = vmul.f32 %v502_v39, %v499_v47 }
 0x2cf   :  { %v506_v50 = vadd.f32 %v504_v48, %v181_v49 }
 0x2d1   :  { %v510_v51 = vsel %vm182_vm15, %v506_v50, -inf }
 0x2d2   :  { %511 = vmax.xlane.f32.xlu0 %v510_v51 }
 0x327   :  { %v635_v52 = vpop.xlane.xlu0 %634 }
 0x328   :  { %v639_v53 = vsub.f32 %v631_v31, %v635_v52 }
 0x32a   :  { %v641_v54 = vmul.f32 1.442695, %v639_v53 }
 0x32c   :  { %1421 = vpow2.f32 %v641_v54 }
 0x32f   :  { %v638_v58 = vpop.xlane.xlu2 %637  ;;  %v1762_v61 = vpop.xlane.xlu0 %300 }
 0x330   :  { %v640_v5 = vsub.f32 %v632_v36, %v638_v58  ;;  %vm305_vm8 = vcmp.gt.f32.partialorder %v1762_v61, 0.5 }
 0x331   :  { %v1790_v47 = vsel %vm305_vm8, 1.0, %v1557_v24 }
 0x332   :  { %v1758_v55 = vpop.eup %1421  ;;  %v643_v8 = vmul.f32 1.442695, %v640_v5 }
 0x333   :  { %v645_v56 = vsel %vm182_vm15, %v1758_v55, 0.0 }
 0x334   :  { %646 = vadd.xlane.f32.xlu0 %v645_v56 }
 0x337   :  { %v185_v43 = vpop.xlane.xlu2 %184 }
 0x338   :  { %vm189_vm12 = vcmp.gt.f32.partialorder %v185_v43, 0.5 }
 0x339   :  { %v1312_v61 = vsel %vm189_vm12, 1.0, %v1557_v24 }
 0x33d   :  { %v509_v63 = vpop.xlane.xlu1 %508 }
 0x33e   :  { %v513_v4 = vsub.f32 %v505_v44, %v509_v63 }
 0x340   :  { %v515_v7 = vmul.f32 1.442695, %v513_v4 }
 0x342   :  { %1423 = vpow2.f32 %v515_v7 }
 0x343   :  { %1425 = vpow2.f32 %v643_v8 }
 0x345   :  { %v512_v9 = vpop.xlane.xlu0 %511 }
 0x346   :  { %v514_v11 = vsub.f32 %v506_v50, %v512_v9  ;;  %v188_v9 = vpop.xlane.xlu2 %187 }
 0x347   :  { %vm190_vm3 = vcmp.gt.f32.partialorder %v188_v9, 0.5 }
 0x348   :  { %v1764_v13 = vpop.eup %1423  ;;  %v517_v15 = vmul.f32 1.442695, %v514_v11 }
 0x349   :  { %v519_v17 = vsel %vm182_vm15, %v1764_v13, 0.0  ;;  %v1768_v21 = vpop.eup %1425 }
 0x34a   :  { %1427 = vpow2.f32 %v517_v15  ;;  %520 = vadd.xlane.f32.xlu0 %v519_v17  ;;  %v648_v23 = vsel %vm182_vm15, %v1768_v21, 0.0 }
 0x350   :  { %v1770_v22 = vpop.eup %1427 }
 0x351   :  { %v522_v25 = vsel %vm182_vm15, %v1770_v22, 0.0 }
 0x352   :  { %649 = vadd.xlane.f32.xlu0 %v648_v23  ;;  %523 = vadd.xlane.f32.xlu1 %v522_v25 }
 0x366   :  { %1397 = vrot.lane.b32.xlu0 %v1396_v18, %s1560_s7 }
 0x36b   :  { %1402 = vrot.lane.b32.xlu1 %v1401_v20, %s1560_s7 }
 0x390   :  { %303 = vmax.xlane.f32.xlu0 %v302_v26  ;;  %v1313_v26 = vsel %vm190_vm3, 1.0, %v1557_v24 }
 0x3a7   :  { %v647_v27 = vpop.xlane.xlu0 %646 }
 0x3a8   :  { %1429 = vrcp.f32 %v647_v27  ;;  %v662_v19 = vand.u32 2147483648, %v647_v27  ;;  %vm656_vm5 = vweird.f32 %v647_v27  ;;  %v660_v37 = vand.u32 2147483647, %v647_v27 }
 0x3aa   :  { %v663_v40 = vor.u32 1.1754944e-38, %v662_v19  ;;  %vm661_vm9 = vcmp.eq.f32.partialorder %v660_v37, 8.507059e+37  ;;  %v740_v37 = vld [vmem:[#allocation2 + $0x50] sm:$0xff] }
 0x3ae   :  { %v1430_v29 = vpop.eup %1429 }
 0x3af   :  { %v652_v31 = vmul.f32 %v1430_v29, %v647_v27  ;;  %vm657_vm4 = vweird.f32 %v1430_v29 }
 0x3b0   :  { %vm658_vm6 = vmor %vm656_vm5, %vm657_vm4 }
 0x3b1   :  { %v653_v34 = vsub.f32 1.0, %v652_v31 }
 0x3b3   :  { %v654_v16 = vmul.f32 %v1430_v29, %v653_v34 }
 0x3b5   :  { %v655_v12 = vadd.f32 %v1430_v29, %v654_v16 }
 0x3b7   :  { %v659_v39 = vsel %vm658_vm6, %v1430_v29, %v655_v12 }
 0x3b8   :  { %v664_v45 = vsel %vm661_vm9, %v663_v40, %v659_v39  ;;  %v738_v39 = vld [vmem:[#allocation2 + $0x40] sm:$0xff]  ;;  %v805_v40 = vld [vmem:[#allocation2 + $0x78] sm:$0xff] }
 0x3b9   :  { %v665_v50 = vmul.f32 %v1790_v47, %v664_v45  ;;  %v802_v45 = vld [vmem:[#allocation2 + $0x60] sm:$0xff] }
 0x3bb   :  { %v681_v4 = vmul.f32 %v1758_v55, %v665_v50 }
 0x3bd   :  { %v521_v28 = vpop.xlane.xlu0 %520 }
 0x3be   :  { %1431 = vrcp.f32 %v521_v28  ;;  %v536_v44 = vand.u32 2147483648, %v521_v28  ;;  %vm530_vm10 = vweird.f32 %v521_v28  ;;  %v534_v46 = vand.u32 2147483647, %v521_v28 }
 0x3c0   :  { %v537_v51 = vor.u32 1.1754944e-38, %v536_v44  ;;  %vm535_vm13 = vcmp.eq.f32.partialorder %v534_v46, 8.507059e+37  ;;  %v803_v44 = vld [vmem:[#allocation2 + $0x68] sm:$0xff] }
 0x3c4   :  { %v1432_v32 = vpop.eup %1431 }
 0x3c5   :  { %v524_v33 = vpop.xlane.xlu1 %523  ;;  %v526_v14 = vmul.f32 %v1432_v32, %v521_v28  ;;  %v1786_v38 = vpop.xlane.xlu0 %649  ;;  %vm531_vm7 = vweird.f32 %v1432_v32 }
 0x3c6   :  { %1433 = vrcp.f32 %v524_v33  ;;  %vm532_vm11 = vmor %vm530_vm10, %vm531_vm7  ;;  %v551_v63 = vand.u32 2147483648, %v524_v33  ;;  %vm545_vm0 = vweird.f32 %v524_v33  ;;  %v549_v5 = vand.u32 2147483647, %v524_v33 }
 0x3c7   :  { %v527_v18 = vsub.f32 1.0, %v526_v14  ;;  %1435 = vrcp.f32 %v1786_v38  ;;  %vm671_vm6 = vweird.f32 %v1786_v38  ;;  %v675_v14 = vand.u32 2147483647, %v1786_v38 }
 0x3c8   :  { %v552_v17 = vor.u32 1.1754944e-38, %v551_v63  ;;  %vm550_vm4 = vcmp.eq.f32.partialorder %v549_v5, 8.507059e+37 }
 0x3c9   :  { %v528_v20 = vmul.f32 %v1432_v32, %v527_v18  ;;  %vm676_vm8 = vcmp.eq.f32.partialorder %v675_v14, 8.507059e+37 }
 0x3cb   :  { %v529_v41 = vadd.f32 %v1432_v32, %v528_v20 }
 0x3cc   :  { %v1434_v36 = vpop.eup %1433 }
 0x3cd   :  { %v541_v6 = vmul.f32 %v1434_v36, %v524_v33  ;;  %v533_v48 = vsel %vm532_vm11, %v1432_v32, %v529_v41  ;;  %vm546_vm14 = vweird.f32 %v1434_v36  ;;  %v1436_v29 = vpop.eup %1435  ;;  %v804_v41 = vld [vmem:[#allocation2 + $0x70] sm:$0xff] }
 0x3ce   :  { %v538_v54 = vsel %vm535_vm13, %v537_v51, %v533_v48  ;;  %vm547_vm2 = vmor %vm545_vm0, %vm546_vm14  ;;  %v667_v31 = vmul.f32 %v1436_v29, %v1786_v38  ;;  %vm672_vm5 = vweird.f32 %v1436_v29 }
 0x3cf   :  { %v542_v42 = vsub.f32 1.0, %v541_v6  ;;  %v539_v8 = vmul.f32 %v1312_v61, %v538_v54  ;;  %vm673_vm7 = vmor %vm671_vm6, %vm672_vm5  ;;  %v741_v6 = vld [vmem:[#allocation2 + $0x58] sm:$0xff] }
 0x3d0   :  { %v668_v32 = vsub.f32 1.0, %v667_v31  ;;  %762 = vmatpush.msra.mxu2 %v741_v6  ;;  %v848_v6 = vld [vmem:[#allocation6 + $0x48] sm:$0xff] }
 0x3d1   :  { %v543_v49 = vmul.f32 %v1434_v36, %v542_v42  ;;  %v555_v25 = vmul.f32 %v1764_v13, %v539_v8  ;;  %v677_v13 = vand.u32 2147483648, %v1786_v38  ;;  %v739_v38 = vld [vmem:[#allocation2 + $0x48] sm:$0xff] }
 0x3d2   :  { %v669_v33 = vmul.f32 %v1436_v29, %v668_v32  ;;  %763 = vmatpush.msra.mxu2 %v740_v37  ;;  %v847_v37 = vld [vmem:[#allocation6 + $0x40] sm:$0xff] }
 0x3d3   :  { %v544_v56 = vadd.f32 %v1434_v36, %v543_v49  ;;  %v678_v18 = vor.u32 1.1754944e-38, %v677_v13 }
 0x3d4   :  { %v670_v34 = vadd.f32 %v1436_v29, %v669_v33  ;;  %764 = vmatpush.msra.mxu2 %v739_v38  ;;  %v886_v38 = vld [vmem:[#allocation6 + $0x78] sm:$0xff] }
 0x3d5   :  { %v548_v15 = vsel %vm547_vm2, %v1434_v36, %v544_v56 }
 0x3d6   :  { %v553_v55 = vsel %vm550_vm4, %v552_v17, %v548_v15  ;;  %v674_v16 = vsel %vm673_vm7, %v1436_v29, %v670_v34  ;;  %765 = vmatpush.msra.mxu2 %v738_v39  ;;  %v885_v39 = vld [vmem:[#allocation6 + $0x70] sm:$0xff] }
 0x3d7   :  { %v554_v27 = vmul.f32 %v1313_v26, %v553_v55 }
 0x3d8   :  { %v1398_v52 = vpop.permute.xlu0 %1397 }
 0x3d9   :  { %v1399_v53 = vunpack.i.l.bf16 %v1398_v52  ;;  %v1400_v58 = vunpack.i.h.bf16 %v1398_v52  ;;  %v556_v28 = vmul.f32 %v1770_v22, %v554_v27  ;;  %v679_v22 = vsel %vm676_vm8, %v678_v18, %v674_v16 }
 0x3db   :  { %709 = vmatpush.msra.mxu1 %v1399_v53 }
 0x3dd   :  { %v1403_v7 = vpop.permute.xlu1 %1402  ;;  %710 = vmatpush.msra.mxu1 %v1400_v58 }
 0x3de   :  { %1347 = vmatmul.msk.f32.vlgmr.msra.gmra.mxu1 %vm182_vm15, %v681_v4  ;;  %v1404_v11 = vunpack.i.l.bf16 %v1403_v7  ;;  %v1405_v23 = vunpack.i.h.bf16 %v1403_v7 }
 0x3df   :  { %907 = vmatpush.msrb.mxu1 %v886_v38 }
 0x3e0   :  { %583 = vmatpush.msrb.mxu3 %v1404_v11 }
 0x3e1   :  { %908 = vmatpush.msrb.mxu1 %v885_v39 }
 0x3e2   :  { %584 = vmatpush.msrb.mxu3 %v1405_v23 }
 0x3e3   :  { %1340 = vmatmul.msk.f32.vlgmr.msrb.gmra.mxu3 %vm182_vm15, %v555_v25 }
 0x3e4   :  { %826 = vmatpush.msra.mxu3 %v805_v40  ;;  %v884_v40 = vld [vmem:[#allocation6 + $0x68] sm:$0xff] }
 0x3e5   :  { %909 = vmatpush.msrb.mxu1 %v884_v40 }
 0x3e6   :  { %827 = vmatpush.msra.mxu3 %v804_v41  ;;  %v883_v41 = vld [vmem:[#allocation6 + $0x60] sm:$0xff] }
 0x3e7   :  { %910 = vmatpush.msrb.mxu1 %v883_v41 }
 0x3e8   :  { %828 = vmatpush.msra.mxu3 %v803_v44 }
 0x3ea   :  { %829 = vmatpush.msra.mxu3 %v802_v45  ;;  %v773_v45 = vstv %s1816_s23 }
 0x3eb   :  { %1341 = vmatmul.msk.f32.gmra.mxu3 %vm182_vm15, %v556_v28 }
 0x403   :  { %v304_v36 = vpop.xlane.xlu0 %303 }
 0x404   :  { %vm306_vm9 = vcmp.gt.f32.partialorder %v304_v36, 0.5 }
 0x405   :  { %v1807_v12 = vsel %vm306_vm9, 1.0, %v1557_v24 }
 0x406   :  { %v680_v19 = vmul.f32 %v1807_v12, %v679_v22 }
 0x408   :  { %v682_v20 = vmul.f32 %v1768_v21, %v680_v19  ;;  %v850_v19 = vld [vmem:[#allocation6 + $0x58] sm:$0xff] }
 0x409   :  { %871 = vmatpush.msrb.mxu0 %v850_v19 }
 0x40a   :  { %1348 = vmatmul.msk.f32.gmra.mxu1 %vm182_vm15, %v682_v20  ;;  %v849_v20 = vld [vmem:[#allocation6 + $0x50] sm:$0xff] }
 0x40b   :  { %872 = vmatpush.msrb.mxu0 %v849_v20 }
 0x40d   :  { %873 = vmatpush.msrb.mxu0 %v848_v6 }
 0x40f   :  { %874 = vmatpush.msrb.mxu0 %v847_v37 }
 0x45b   :  { %v712_v42 = vpop.f32.mrf.mxu1 }
 0x45c   :  { %v719_v43 = vmul.f32 %v712_v42, %v712_v42 }
 0x45e   :  { %v721_v21 = vmul.f32 %v719_v43, %v712_v42  ;;  %v777_v43 = vstv %s776_s24 }
 0x460   :  { %v723_v46 = vmul.f32 0.044715, %v721_v21 }
 0x462   :  { %v725_v48 = vadd.f32 %v723_v46, %v712_v42  ;;  %v778_v46 = vmul.f32 %v777_v43, %v349_v62 }
 0x464   :  { %v727_v49 = vmul.f32 0.7978846, %v725_v48 }
 0x466   :  { %1437 = vtanh.f32 %v727_v49  ;;  %v586_v50 = vpop.f32.mrf.mxu3 }
 0x467   :  { %v783_v51 = vmul.f32 %v586_v50, %v586_v50 }
 0x469   :  { %v785_v52 = vmul.f32 %v783_v51, %v586_v50  ;;  %v841_v51 = vstv %s840_s28 }
 0x46b   :  { %v787_v53 = vmul.f32 0.044715, %v785_v52 }
 0x46c   :  { %v1438_v54 = vpop.eup %1437 }
 0x46d   :  { %v731_v56 = vadd.f32 1.0, %v1438_v54  ;;  %v789_v58 = vadd.f32 %v787_v53, %v586_v50  ;;  %v837_v53 = vstv %s1351_s27 }
 0x46e   :  { %v589_v61 = vpop.f32.mrf.mxu3 }
 0x46f   :  { %v733_v63 = vmul.f32 0.5, %v731_v56  ;;  %v791_v4 = vmul.f32 0.7978846, %v789_v58  ;;  %v784_v5 = vmul.f32 %v589_v61, %v589_v61  ;;  %v842_v56 = vmul.f32 %v841_v51, %v389_v60 }
 0x471   :  { %v735_v7 = vmul.f32 %v733_v63, %v712_v42  ;;  %1439 = vtanh.f32 %v791_v4  ;;  %v786_v8 = vmul.f32 %v784_v5, %v589_v61  ;;  %v1415_v42 = vld [vmem:[%s1899_s3 + $0x2] ss:$0 sm:$0xff]  ;;  %v843_v63 = vmul.f32 %v841_v51, %v390_v2 }
 0x473   :  { %v788_v9 = vmul.f32 0.044715, %v786_v8  ;;  %1349 = vmatmul.msk.f32.vlgmr.msra.gmra.mxu2 %vm319_vm1, %v735_v7 }
 0x475   :  { %v790_v11 = vadd.f32 %v788_v9, %v589_v61  ;;  %v779_v9 = vmul.f32 %v777_v43, %v350_v3 }
 0x477   :  { %v1440_v15 = vpop.eup %1439  ;;  %v792_v17 = vmul.f32 0.7978846, %v790_v11 }
 0x478   :  { %v795_v23 = vadd.f32 1.0, %v1440_v15 }
 0x479   :  { %1441 = vtanh.f32 %v792_v17 }
 0x47a   :  { %v797_v25 = vmul.f32 0.5, %v795_v23 }
 0x47c   :  { %v799_v55 = vmul.f32 %v797_v25, %v586_v50  ;;  %v1416_v50 = vld [vmem:[%s1899_s3 + $0x3] ss:$0 sm:$0xff] }
 0x47e   :  { %1352 = vmatmul.msk.f32.vlgmr.msra.gmra.mxu3 %vm319_vm1, %v799_v55 }
 0x47f   :  { %v1442_v26 = vpop.eup %1441 }
 0x480   :  { %v796_v27 = vadd.f32 1.0, %v1442_v26 }
 0x482   :  { %v798_v28 = vmul.f32 0.5, %v796_v27 }
 0x484   :  { %v800_v29 = vmul.f32 %v798_v28, %v589_v61 }
 0x486   :  { %1353 = vmatmul.msk.f32.gmra.mxu3 %vm319_vm1, %v800_v29  ;;  %v958_v29 = vstv %s1358_s13 }
 0x487   :  { %v715_v31 = vpop.f32.mrf.mxu1 }
 0x488   :  { %v720_v32 = vmul.f32 %v715_v31, %v715_v31 }
 0x48a   :  { %v722_v33 = vmul.f32 %v720_v32, %v715_v31 }
 0x48c   :  { %v724_v34 = vmul.f32 0.044715, %v722_v33 }
 0x48e   :  { %v726_v13 = vadd.f32 %v724_v34, %v715_v31 }
 0x490   :  { %v728_v14 = vmul.f32 0.7978846, %v726_v13 }
 0x492   :  { %1443 = vtanh.f32 %v728_v14 }
 0x498   :  { %v1444_v16 = vpop.eup %1443 }
 0x499   :  { %v732_v18 = vadd.f32 1.0, %v1444_v16 }
 0x49b   :  { %v734_v36 = vmul.f32 0.5, %v732_v18 }
 0x49d   :  { %v736_v22 = vmul.f32 %v734_v36, %v715_v31 }
 0x49f   :  { %1350 = vmatmul.msk.f32.gmra.mxu2 %vm319_vm1, %v736_v22 }
 0x4f6   :  { %v767_v44 = vpop.f32.mrf.mxu2 }
 0x4f7   :  { %v768_v21 = vadd.f32 %v1415_v42, %v767_v44  ;;  %v1112_v44 = vld [vmem:[%s1902_s6] sm:$0xff] }
 0x4f9   :  { %v774_v48 = vmul.f32 %v773_v45, %v768_v21 }
 0x4fb   :  { %v1825_v49 = vadd.f32 %v778_v46, %v774_v48 }
 0x4fd   :  { %1354 = vmatmul.msk.f32.vlgmr.msrb.gmra.mxu0 %vm319_vm1, %v1825_v49 }
 0x501   :  { %v831_v52 = vpop.f32.mrf.mxu3 }
 0x502   :  { %v832_v54 = vadd.f32 %v1416_v50, %v831_v52 }
 0x504   :  { %v838_v59 = vmul.f32 %v837_v53, %v832_v54 }
 0x506   :  { %v844_v62 = vadd.f32 %v842_v56, %v838_v59 }
 0x508   :  { %1356 = vmatmul.msk.f32.vlgmr.msrb.gmra.mxu1 %vm319_vm1, %v844_v62 }
 0x509   :  { %v834_v58 = vpop.f32.mrf.mxu3 }
 0x50a   :  { %v835_v61 = vadd.f32 %v1416_v50, %v834_v58 }
 0x50c   :  { %v839_v4 = vmul.f32 %v837_v53, %v835_v61 }
 0x50e   :  { %v845_v5 = vadd.f32 %v843_v63, %v839_v4 }
 0x510   :  { %1357 = vmatmul.msk.f32.gmra.mxu1 %vm319_vm1, %v845_v5 }
 0x522   :  { %v770_v7 = vpop.f32.mrf.mxu2 }
 0x523   :  { %v771_v8 = vadd.f32 %v1415_v42, %v770_v7 }
 0x525   :  { %v775_v57 = vmul.f32 %v773_v45, %v771_v8 }
 0x527   :  { %v1840_v60 = vadd.f32 %v779_v9, %v775_v57 }
 0x529   :  { %1355 = vmatmul.msk.f32.gmra.mxu0 %vm319_vm1, %v1840_v60 }
 0x57a   :  { %v876_v2 = vpop.f32.mrf.mxu0 }
 0x57b   :  { %v877_v11 = vadd.f32 %v1417_v0, %v876_v2 }
 0x57d   :  { %921 = vrot.lane.b32.xlu2 %v877_v11, %s1558_s20 }
 0x585   :  { %v912_v15 = vpop.f32.mrf.mxu1 }
 0x586   :  { %v913_v17 = vadd.f32 %v1418_v1, %v912_v15 }
 0x58d   :  { %v915_v3 = vpop.f32.mrf.mxu1 }
 0x58e   :  { %v916_v23 = vadd.f32 %v1418_v1, %v915_v3  ;;  %v1071_v1 = vld [vmem:[#allocation2 + $0x98] sm:$0xff]  ;;  %v1070_v3 = vld [vmem:[#allocation2 + $0x90] sm:$0xff] }
 0x58f   :  { %1092 = vmatpush.msra.mxu0 %v1071_v1 }
 0x590   :  { %v1406_v25 = vpack.i.bf16 %v913_v17, %v916_v23  ;;  %1359 = vmatpush.xpose.msk.msrb.mxu2 %vm319_vm1, %v916_v23  ;;  %v1068_v23 = vld [vmem:[#allocation2 + $0x80] sm:$0xff] }
 0x591   :  { %1093 = vmatpush.msra.mxu0 %v1070_v3 }
 0x594   :  { %1360 = vmatpush.xpose.msk.msrb.mxu2 %vm319_vm1, %v913_v17  ;;  %v1069_v17 = vld [vmem:[#allocation2 + $0x88] sm:$0xff] }
 0x595   :  { %1094 = vmatpush.msra.mxu0 %v1069_v17 }
 0x597   :  { %1095 = vmatpush.msra.mxu0 %v1068_v23 }
 0x5a6   :  { %v879_v55 = vpop.f32.mrf.mxu0 }
 0x5a7   :  { %v880_v26 = vadd.f32 %v1417_v0, %v879_v55 }
 0x5a9   :  { %923 = vrot.lane.b32.xlu0 %v880_v26, %s1558_s20  ;;  %s1287_s20 = sshll.u32 %s1561_s4, 4  ;;  %s1288_s20 = int_to_ptr.vmem [resolvable:$true] %s1287_s20 }
 0x5d7   :  { %v922_v27 = vpop.permute.xlu2 %921 }
 0x5d8   :  { %1361 = vmatmul.msk.f32.vlgmr.msrb.gmra.mxu2 %vm319_vm1, %v922_v27 }
 0x61b   :  { %v924_v28 = vpop.permute.xlu0 %923 }
 0x61c   :  { %1362 = vmatmul.msk.f32.gmra.mxu2 %vm319_vm1, %v924_v28 }
 0x65b   :  { %v952_v31 = vpop.f32.mrf.mxu2 }
 0x65c   :  { %v959_v32 = vmul.f32 %v958_v29, %v952_v31 }
 0x65e   :  { %v961_v33 = vadd.f32 %v959_v32, %v1742_v30  ;;  %v1113_v30 = vld [vmem:[%s1902_s6 + $0x8] sm:$0xff]  ;;  %s1365_s6 = sld [smem:[#allocation8 + $0x4]] }
 0x660   :  { %v963_v34 = vsel %vm182_vm15, %v961_v33, -inf }
 0x661   :  { %964 = vmax.xlane.f32.xlu1 %v963_v34 }
 0x664   :  { %s1106_s17 = ssub.f32 1.0, %s1365_s6 }
 0x69f   :  { %v955_v13 = vpop.f32.mrf.mxu2 }
 0x6a0   :  { %v960_v14 = vmul.f32 %v958_v29, %v955_v13 }
 0x6a2   :  { %v962_v16 = vadd.f32 %v960_v14, %v1747_v35 }
 0x6a4   :  { %v966_v18 = vsel %vm182_vm15, %v962_v16, -inf }
 0x6a5   :  { %967 = vmax.xlane.f32.xlu0 %v966_v18 }
 0x6b9   :  { %1407 = vrot.lane.b32.xlu0 %v1406_v25, %s1560_s7  ;;  %s1289_s7 = sshll.u32 %s1904_s8, 4  ;;  %s1290_s7 = int_to_ptr.hbm [resolvable:$true] %s1289_s7 }
 0x6d4   :  { %v965_v36 = vpop.xlane.xlu1 %964 }
 0x6d5   :  { %v969_v22 = vsub.f32 %v961_v33, %v965_v36 }
 0x6d7   :  { %v971_v19 = vmul.f32 1.442695, %v969_v22 }
 0x6d9   :  { %1445 = vpow2.f32 %v971_v19 }
 0x6df   :  { %v1446_v20 = vpop.eup %1445 }
 0x6e0   :  { %v975_v6 = vsel %vm182_vm15, %v1446_v20, 0.0 }
 0x6e1   :  { %976 = vadd.xlane.f32.xlu2 %v975_v6 }
 0x6f9   :  { %1118 = vperm.xlu2 %1393, %v1113_v30   ;;  %v1159_v30 = vld [vmem:[#allocation2 + $0xd8] sm:$0xff] }
 0x718   :  { %v968_v37 = vpop.xlane.xlu0 %967 }
 0x719   :  { %v970_v35 = vsub.f32 %v962_v16, %v968_v37  ;;  %v1158_v37 = vld [vmem:[#allocation2 + $0xd0] sm:$0xff] }
 0x71b   :  { %v973_v38 = vmul.f32 1.442695, %v970_v35  ;;  %v1216_v35 = vld [vmem:[#allocation2 + $0x100] sm:$0xff] }
 0x71c   :  { %1222 = vxpose.xlu0.b32.start [1/4] (short) (narrow) %v1216_v35, 8 }
 0x71d   :  { %1447 = vpow2.f32 %v973_v38  ;;  %v1157_v38 = vld [vmem:[#allocation2 + $0xc8] sm:$0xff] }
 0x723   :  { %v1448_v39 = vpop.eup %1447 }
 0x724   :  { %v978_v40 = vsel %vm182_vm15, %v1448_v39, 0.0 }
 0x725   :  { %979 = vadd.xlane.f32.xlu1 %v978_v40  ;;  %v1419_v40 = vld [vmem:[%s1899_s3 + $0x4] ss:$0 sm:$0xff] }
 0x72b   :  { %v1408_v41 = vpop.permute.xlu0 %1407 }
 0x72c   :  { %v1409_v42 = vunpack.i.l.bf16 %v1408_v41  ;;  %v1410_v43 = vunpack.i.h.bf16 %v1408_v41 }
 0x72e   :  { %1039 = vmatpush.msrb.mxu3 %v1409_v42  ;;  %v1103_v42 = vstv %s1365_s6 }
 0x730   :  { %1040 = vmatpush.msrb.mxu3 %v1410_v43 }
 0x732   :  { %1203 = vmatpush.msra.mxu3 %v1159_v30 }
 0x734   :  { %1204 = vmatpush.msra.mxu3 %v1158_v37 }
 0x736   :  { %1205 = vmatpush.msra.mxu3 %v1157_v38 }
 0x73e   :  { %1115 = vperm.xlu1 %1394, %v1112_v44  }
 0x754   :  { %v977_v45 = vpop.xlane.xlu2 %976 }
 0x755   :  { %1449 = vrcp.f32 %v977_v45  ;;  %v992_v50 = vand.u32 2147483648, %v977_v45  ;;  %v990_v52 = vand.u32 2147483647, %v977_v45  ;;  %vm986_vm11 = vweird.f32 %v977_v45 }
 0x757   :  { %v993_v54 = vor.u32 1.1754944e-38, %v992_v50  ;;  %vm991_vm13 = vcmp.eq.f32.partialorder %v990_v52, 8.507059e+37 }
 0x75b   :  { %v1450_v21 = vpop.eup %1449 }
 0x75c   :  { %v982_v46 = vmul.f32 %v1450_v21, %v977_v45  ;;  %vm987_vm10 = vweird.f32 %v1450_v21  ;;  %v1107_v45 = vstv %s1106_s17 }
 0x75d   :  { %vm988_vm12 = vmor %vm986_vm11, %vm987_vm10  ;;  %v1108_v52 = vmul.f32 %v1107_v45, %v1825_v49  ;;  %v1164_v49 = vld [vmem:[#allocation2 + $0xf8] sm:$0xff] }
 0x75e   :  { %v983_v48 = vsub.f32 1.0, %v982_v46  ;;  %1180 = vmatpush.msra.mxu2 %v1164_v49 }
 0x760   :  { %v984_v51 = vmul.f32 %v1450_v21, %v983_v48 }
 0x762   :  { %v985_v53 = vadd.f32 %v1450_v21, %v984_v51 }
 0x764   :  { %v989_v56 = vsel %vm988_vm12, %v1450_v21, %v985_v53  ;;  %v1109_v21 = vmul.f32 %v1107_v45, %v1840_v60 }
 0x765   :  { %v994_v59 = vsel %vm991_vm13, %v993_v54, %v989_v56  ;;  %v1119_v56 = vpop.permute.xlu2 %1118 }
 0x766   :  { %v995_v62 = vmul.f32 %v1790_v47, %v994_v59  ;;  %vm1121_vm5 = vcmp.eq.s32.totalorder %v1634_v10, %v1119_v56  ;;  %v1217_v59 = vld [vmem:[#allocation2 + $0x108] sm:$0xff] }
 0x767   :  { %v1369_v60 = vsel %vm1121_vm5, 1.0, %v1557_v24  ;;  %1223 = vxpose.xlu0.b32.cont [2/4] (short) (narrow) %v1217_v59, 8 }
 0x768   :  { %v1011_v58 = vmul.f32 %v1446_v20, %v995_v62  ;;  %v1156_v62 = vld [vmem:[#allocation2 + $0xc0] sm:$0xff] }
 0x769   :  { %1206 = vmatpush.msra.mxu3 %v1156_v62 }
 0x76a   :  { %1363 = vmatmul.msk.f32.vlgmr.msrb.gmra.mxu3 %vm182_vm15, %v1011_v58  ;;  %v1163_v58 = vld [vmem:[#allocation2 + $0xf0] sm:$0xff] }
 0x76b   :  { %1181 = vmatpush.msra.mxu2 %v1163_v58 }
 0x798   :  { %v980_v61 = vpop.xlane.xlu1 %979 }
 0x799   :  { %1451 = vrcp.f32 %v980_v61  ;;  %v1007_v7 = vand.u32 2147483648, %v980_v61  ;;  %v1005_v9 = vand.u32 2147483647, %v980_v61  ;;  %vm1001_vm0 = vweird.f32 %v980_v61 }
 0x79b   :  { %v1008_v0 = vor.u32 1.1754944e-38, %v1007_v7  ;;  %vm1006_vm3 = vcmp.eq.f32.partialorder %v1005_v9, 8.507059e+37  ;;  %v1420_v7 = vld [vmem:[%s1899_s3 + $0x6] ss:$0 sm:$0xff] }
 0x79f   :  { %v1452_v63 = vpop.eup %1451 }
 0x7a0   :  { %v997_v4 = vmul.f32 %v1452_v63, %v980_v61  ;;  %vm1002_vm14 = vweird.f32 %v1452_v63  ;;  %v1218_v61 = vld [vmem:[#allocation2 + $0x110] sm:$0xff] }
 0x7a1   :  { %vm1003_vm2 = vmor %vm1001_vm0, %vm1002_vm14  ;;  %1224 = vxpose.xlu0.b32.cont [3/4] (short) (narrow) %v1218_v61, 8 }
 0x7a2   :  { %v998_v5 = vsub.f32 1.0, %v997_v4  ;;  %v1161_v4 = vld [vmem:[#allocation2 + $0xe0] sm:$0xff] }
 0x7a4   :  { %v999_v8 = vmul.f32 %v1452_v63, %v998_v5  ;;  %v1219_v5 = vld [vmem:[#allocation2 + $0x118] sm:$0xff] }
 0x7a6   :  { %v1000_v57 = vadd.f32 %v1452_v63, %v999_v8 }
 0x7a8   :  { %v1004_v2 = vsel %vm1003_vm2, %v1452_v63, %v1000_v57  ;;  %v1162_v63 = vld [vmem:[#allocation2 + $0xe8] sm:$0xff] }
 0x7a9   :  { %v1009_v11 = vsel %vm1006_vm3, %v1008_v0, %v1004_v2  ;;  %1182 = vmatpush.msra.mxu2 %v1162_v63  ;;  %1225 = vxpose.xlu0.b32.end [4/4] (short) (narrow) %v1219_v5, 8 }
 0x7aa   :  { %v1010_v47 = vmul.f32 %v1807_v12, %v1009_v11 }
 0x7ab   :  { %1183 = vmatpush.msra.mxu2 %v1161_v4 }
 0x7ac   :  { %v1012_v15 = vmul.f32 %v1448_v39, %v1010_v47  ;;  %v1221_v47 = vstv %s1374_s2 }
 0x7ae   :  { %1364 = vmatmul.msk.f32.gmra.mxu3 %vm182_vm15, %v1012_v15 }
 0x7b0   :  { %v1116_v46 = vpop.permute.xlu1 %1115 }
 0x7b1   :  { %vm1120_vm4 = vcmp.eq.s32.totalorder %v1634_v10, %v1116_v46 }
 0x7b2   :  { %v1368_v54 = vsel %vm1120_vm4, 1.0, %v1557_v24 }
 0x7ed   :  { %v1042_v25 = vpop.f32.mrf.mxu3 }
 0x7ee   :  { %v1049_v55 = vmul.f32 %v1042_v25, %v1042_v25 }
 0x7f0   :  { %v1051_v26 = vmul.f32 %v1049_v55, %v1042_v25 }
 0x7f2   :  { %v1053_v27 = vmul.f32 0.044715, %v1051_v26 }
 0x7f4   :  { %v1055_v28 = vadd.f32 %v1053_v27, %v1042_v25 }
 0x7f6   :  { %v1057_v29 = vmul.f32 0.7978846, %v1055_v28 }
 0x7f8   :  { %1453 = vtanh.f32 %v1057_v29 }
 0x7fe   :  { %v1454_v31 = vpop.eup %1453 }
 0x7ff   :  { %v1061_v12 = vadd.f32 1.0, %v1454_v31 }
 0x801   :  { %v1063_v32 = vmul.f32 0.5, %v1061_v12 }
 0x803   :  { %v1065_v33 = vmul.f32 %v1063_v32, %v1042_v25 }
 0x805   :  { %1366 = vmatmul.msk.f32.vlgmr.msra.gmra.mxu0 %vm319_vm1, %v1065_v33 }
 0x831   :  { %v1045_v34 = vpop.f32.mrf.mxu3 }
 0x832   :  { %v1050_v13 = vmul.f32 %v1045_v34, %v1045_v34 }
 0x834   :  { %v1052_v14 = vmul.f32 %v1050_v13, %v1045_v34 }
 0x835   :  { %v1238_v11 = vpop.trf.xlu0 }
 0x836   :  { %v1054_v16 = vmul.f32 0.044715, %v1052_v14 }
 0x838   :  { %v1056_v18 = vadd.f32 %v1054_v16, %v1045_v34 }
 0x83a   :  { %v1058_v36 = vmul.f32 0.7978846, %v1056_v18 }
 0x83c   :  { %1455 = vtanh.f32 %v1058_v36 }
 0x842   :  { %v1456_v22 = vpop.eup %1455 }
 0x843   :  { %v1062_v19 = vadd.f32 1.0, %v1456_v22 }
 0x845   :  { %v1064_v20 = vmul.f32 0.5, %v1062_v19 }
 0x847   :  { %v1066_v6 = vmul.f32 %v1064_v20, %v1045_v34 }
 0x849   :  { %1367 = vmatmul.msk.f32.gmra.mxu0 %vm319_vm1, %v1066_v6 }
 0x882   :  { %v1097_v39 = vpop.f32.mrf.mxu0 }
 0x883   :  { %v1098_v41 = vadd.f32 %v1419_v40, %v1097_v39 }
 0x885   :  { %v1104_v48 = vmul.f32 %v1103_v42, %v1098_v41 }
 0x887   :  { %v1110_v53 = vadd.f32 %v1108_v52, %v1104_v48 }
 0x8c6   :  { %v1100_v43 = vpop.f32.mrf.mxu0 }
 0x8c7   :  { %v1101_v44 = vadd.f32 %v1419_v40, %v1100_v43 }
 0x8c9   :  { %v1105_v50 = vmul.f32 %v1103_v42, %v1101_v44 }
 0x8cb   :  { %v1111_v51 = vadd.f32 %v1109_v21, %v1105_v50 }
 0x8cd   :  { %1146 = vmatpush.msra.mxu1 %v1111_v51 }
 0x8cf   :  { %1147 = vmatpush.msra.mxu1 %v1110_v53 }
 0x8d0   :  { %1370 = vmatmul.msk.f32.vlgmr.msra.gmra.mxu1 %vm182_vm15, %v1368_v54 }
 0x8d8   :  { %1371 = vmatmul.msk.f32.gmra.mxu1 %vm182_vm15, %v1369_v60  ;;  %vm1280_vm15 = vcmask 57344  }
 0x94d   :  { %v1149_v10 = vpop.f32.mrf.mxu1 }
 0x94e   :  { %1373 = vmatmul.msk.f32.vlgmr.msra.gmra.mxu3 %vm319_vm1, %v1149_v10 }
 0x955   :  { %v1152_v24 = vpop.f32.mrf.mxu1 }
 0x956   :  { %1372 = vmatmul.msk.f32.vlgmr.msra.gmra.mxu2 %vm319_vm1, %v1152_v24 }
 0x9d1   :  { %v1208_v8 = vpop.f32.mrf.mxu3 }
 0x9d9   :  { %v1185_v9 = vpop.f32.mrf.mxu2 }
 0x9da   :  { %v1209_v57 = vadd.f32 %v1208_v8, %v1185_v9 }
 0x9dc   :  { %v1213_v0 = vadd.f32 %v1420_v7, %v1209_v57 }
 0x9de   :  { %v1214_v2 = vmax.f32 %v1213_v0, 0.0 }
 0x9e0   :  { %1375 = vmatpush.xpose.msk.msrb.mxu2 %vm319_vm1, %v1214_v2 }
 0x9e3   :  { %1376 = vmatmul.msk.f32.vlgmr.msrb.gmra.mxu2 %vm319_vm1, %v1238_v11 }
 0xa66   :  { %v1277_v15 = vpop.f32.mrf.mxu2 }
 0xa67   :  { %v1278_v1 = vadd.f32 %v1277_v15, %v1221_v47 }
 0xa69   :  { %1281 = vst.msk [vmem:[#allocation9] sm:$0x1] %vm1280_vm15, %v1278_v1 }
 0xa6a   :  { %1292 = dma.vmem_to_hbm [thread:$0]  %s1288_s20, 16, %s1290_s7, [#allocation4]  }
 0xa6b   :  { %1547 = dma.done.wait [#allocation4], 16  }
 0xa6c   :  { %1548 = vsyncadd [#allocation4], 4294967280 }
 0xa6d   :  { %1297 = vsyncpa [#allocation3], 1 }
 0xa6e   :  { %1298 = vsyncpa [#allocation7], 1 }
 0xa6f   :  { %1299 = vsyncpa [#allocation4], 1 }
 0xa70   :  { %1300 = vsyncpa [#allocation5], 1 }

</bundles_post_ra>
